<compile_context>
chip_gen: v6e
topology: v6e:2x2x1
jax: 0.10.0
libtpu: 0.0.40
codegen_flags: <defaults>
</compile_context>

<pallas_src>
import functools

import numpy as np
import jax
import jax.numpy as jnp
from jax.experimental import pallas as pl
from jax.experimental.pallas import tpu as pltpu


def _layernorm(x, g, b, eps=1e-5):
    # PyTorch nn.LayerNorm: biased variance, eps=1e-5.  Kept in f32 (v5e has no bf16
    # VPU); bf16 is only used at MXU inputs.
    mu = jnp.mean(x, axis=-1, keepdims=True)
    var = jnp.mean((x - mu) ** 2, axis=-1, keepdims=True)
    return (x - mu) * jax.lax.rsqrt(var + eps) * g + b


def spectral_transformer_kernel(
    # inputs ------------------------------------------------------------
    x_ref,        # (Bt, N, P_in) f32   per-spectral-patch flattened cube (batch slab)
    conv_m_ref,   # (P_in, E)     bf16  Conv3d(+replicate pad, stride 2) as dense matmul
    gE_ref,       # (3, E)        f32   rows: [conv_b, ln0_g, ln0_b]
    w_emb_ref,    # (E, dim)      bf16  Linear(E, dim).weight.T
    gD_ref,       # (6, dim)      f32   rows: [b_emb, ln1_g, ln1_b, cls+pos0, fin_g, fin_b]
    pos_tok_ref,  # (N, dim)      f32   pos_embedding[:, 1:N+1]
    w_qkv_ref,    # (1, dim, 3*inner) bf16  layer d, head-major columns: per head [q|k|v]
    o_w_ref,      # (1, inner, dim)   bf16  layer d, to_out Linear
    ff_w1_ref,    # (1, dim, mlp)     bf16  layer d
    ff_w2_ref,    # (1, mlp, dim)     bf16  layer d
    lvec_ref,     # (1, 6, dim)       f32   rows: [a_ln_g, a_ln_b, o_b, f_ln_g, f_ln_b, ff_b2]
    ff_b1_ref,    # (1, 1, mlp)       f32   layer d
    # output ------------------------------------------------------------
    o_ref,        # (Bt, 1, dim)  f32  pooled latent (written only on the last depth step)
    # scratch -----------------------------------------------------------
    xs_ref,       # (Bt, Sp, dim) f32  residual stream, persists across the depth grid axis
    *, heads, dim_head, pool):
    f32 = jnp.float32
    bf16 = jnp.bfloat16
    Bt, N, P_in = x_ref.shape
    Sp, dim = xs_ref.shape[1], xs_ref.shape[2]
    inner = heads * dim_head
    S = N + 1                                  # real sequence length (tokens + cls)
    d_id = pl.program_id(1)
    n_layers = pl.num_programs(1)

    # ---- depth step 0: patch embedding + sequence assembly -------------------------
    @pl.when(d_id == 0)
    def _embed():
        x2 = x_ref[...].reshape(Bt * N, P_in)
        feat = jnp.dot(x2.astype(bf16), conv_m_ref[...], preferred_element_type=f32)
        feat = jnp.maximum(feat + gE_ref[0:1, :], 0.0)                  # Conv3d + ReLU (dense fold)
        h = _layernorm(feat, gE_ref[1:2, :], gE_ref[2:3, :])
        h = jnp.dot(h.astype(bf16), w_emb_ref[...],
                    preferred_element_type=f32) + gD_ref[0:1, :]
        h = _layernorm(h, gD_ref[1:2, :], gD_ref[2:3, :])               # (Bt*N, dim)
        h3 = h.reshape(Bt, N, dim) + pos_tok_ref[...]                   # + pos_embedding[:, 1:]
        # Sequence layout: rows [0,N) = spectral tokens, row N = cls token, rows (N,Sp) = pad.
        # (Attention / per-row ops are permutation-equivariant, so this ordering is free.)
        if Sp > S:
            # zero only the tail rows (the cls slot is rewritten just below)
            xs_ref[:, N:Sp, :] = jnp.zeros((Bt, Sp - N, dim), f32)
        xs_ref[:, 0:N, :] = h3
        xs_ref[:, N:N + 1, :] = jnp.broadcast_to(
            gD_ref[3:4, :].reshape(1, 1, dim), (Bt, 1, dim))            # cls_token + pos[0]

    # key-padding bias so padded key columns contribute nothing to the softmax
    if Sp > S:
        col = jax.lax.broadcasted_iota(jnp.int32, (Sp, Sp), 1)
        key_bias = jnp.where(col < S, 0.0, -1e30).astype(f32)           # (Sp, Sp)
    else:
        key_bias = None

    a_ln_g = lvec_ref[0, 0:1, :]
    a_ln_b = lvec_ref[0, 1:2, :]
    o_b = lvec_ref[0, 2:3, :]
    f_ln_g = lvec_ref[0, 3:4, :]
    f_ln_b = lvec_ref[0, 4:5, :]
    ff_b2 = lvec_ref[0, 5:6, :]
    scale = dim_head ** -0.5

    xs = xs_ref[...].reshape(Bt * Sp, dim)                              # carried residual stream

    # ---- Spe_Attention (layer d) ----------------------------------------------------
    hn = _layernorm(xs, a_ln_g, a_ln_b)
    qkv = jnp.dot(hn.astype(bf16), w_qkv_ref[0],
                  preferred_element_type=f32)                           # (Bt*Sp, 3*inner)
    qkv = qkv.reshape(Bt, Sp, 3 * inner)
    # Fold heads into the leading batch dim so QK^T / softmax / PV are each ONE batched
    # op over heads*Bt instead of a per-head Python loop.
    # TODO(synk): a single 'bqhd,bkhd->bhqk' einsum would avoid the explicit concatenate,
    # but multi-batch-dim dot_general / 4-D middle-dim transposes are not reliably lowered
    # by Mosaic, so heads are folded via a leading-axis concatenate instead.
    if heads > 1:
        qkv_h = jnp.concatenate(
            [qkv[:, :, hh * 3 * dim_head:(hh + 1) * 3 * dim_head] for hh in range(heads)],
            axis=0)                                                     # (heads*Bt, Sp, 3*dh)
    else:
        qkv_h = qkv
    q = qkv_h[:, :, 0:dim_head]
    k = qkv_h[:, :, dim_head:2 * dim_head]
    v = qkv_h[:, :, 2 * dim_head:3 * dim_head]
    dots = jnp.einsum('bqd,bkd->bqk', q.astype(bf16), k.astype(bf16),
                      preferred_element_type=f32) * scale               # (heads*Bt, Sp, Sp)
    if key_bias is not None:
        dots = dots + key_bias
    dots = dots - jnp.max(dots, axis=-1, keepdims=True)
    p = jnp.exp(dots)
    p = p * pl.reciprocal(jnp.sum(p, axis=-1, keepdims=True), approx=True)
    ctx = jnp.einsum('bqk,bkd->bqd', p.astype(bf16), v.astype(bf16),
                     preferred_element_type=f32)                        # (heads*Bt, Sp, dh)
    if heads > 1:
        ctx = jnp.concatenate(
            [ctx[hh * Bt:(hh + 1) * Bt] for hh in range(heads)], axis=-1)  # (Bt, Sp, inner)
    proj = jnp.dot(ctx.reshape(Bt * Sp, inner).astype(bf16), o_w_ref[0],
                   preferred_element_type=f32) + o_b                    # (Bt*Sp, dim)
    xs = xs + proj                                                      # attn(x) + x

    # ---- FeedForward (layer d) ------------------------------------------------------
    hn = _layernorm(xs, f_ln_g, f_ln_b)
    h1 = jnp.dot(hn.astype(bf16), ff_w1_ref[0],
                 preferred_element_type=f32) + ff_b1_ref[0]
    # TODO(synk): PyTorch nn.GELU() is the exact erf form; lax.erf has no Mosaic lowering,
    # so the tanh approximation is used (~1e-3 max abs difference).
    h1 = jax.nn.gelu(h1, approximate=True)
    h2 = jnp.dot(h1.astype(bf16), ff_w2_ref[0],
                 preferred_element_type=f32) + ff_b2
    xs = xs + h2                                                        # ff(x) + x

    xs_ref[...] = xs.reshape(Bt, Sp, dim)                               # carry to layer d+1

    # ---- last depth step: final LayerNorm + pool -------------------------------------
    @pl.when(d_id == n_layers - 1)
    def _finalize():
        xsf = _layernorm(xs, gD_ref[4:5, :], gD_ref[5:6, :])
        xs3 = xsf.reshape(Bt, Sp, dim)
        if pool == "mean":
            if Sp > S:
                row = jax.lax.broadcasted_iota(jnp.int32, (Sp, 1), 0)
                rmask = (row < S).astype(f32)
                pooled = jnp.sum(xs3 * rmask, axis=1, keepdims=True) * (1.0 / S)
            else:
                pooled = jnp.mean(xs3, axis=1, keepdims=True)
        else:
            pooled = xs3[:, N:N + 1, :]                                 # cls row lives at row N
        o_ref[...] = pooled


def init_params(key, *, spe_patch_size, H, W, dim, depth, heads, dim_head,
                mlp_dim, num_patches):
    """Deterministic synthetic parameters matching the module's shapes (bf16 matmul weights,
    small f32 vectors packed into gE / gD / lvec)."""
    c2 = spe_patch_size
    D_out = (c2 - 3) // 2 + 1            # conv depth-out  == (spe_patch_size - 1) // 2
    H_out = (H + 1) // 2 + 1             # conv height-out == (H + 3) // 2
    W_out = (W + 1) // 2 + 1
    E = 3 * D_out * H_out * W_out        # conv_embedding_dim
    P_in = c2 * H * W
    inner = heads * dim_head
    bf16 = jnp.bfloat16

    ks = jax.random.split(key, 14)

    def nrm(k, shape, s=0.05):
        return (s * jax.random.normal(k, shape)).astype(jnp.float32)

    # Conv3d(1, 3, (3,3,3), padding=(0,2,2) replicate, stride=(2,2,2)) as a dense matrix:
    #   out[o,dz,dy,dx] = b[o] + sum_{kz,ky,kx} w[o,kz,ky,kx] * in[2dz+kz, clamp(2dy+ky-2), clamp(2dx+kx-2)]
    # TODO(synk): at realistic H/W the dense fold is O((spe*H*W)^2); switch to an im2col
    # (per-tap strided-slice + small matmul) formulation before scaling the image size.
    conv_w = np.asarray(nrm(ks[0], (3, 3, 3, 3), 0.3))   # (out=3, kz, ky, kx)
    conv_b = np.asarray(nrm(ks[1], (3,), 0.1))
    conv_m = np.zeros((P_in, E), np.float32)
    conv_bias = np.zeros((E,), np.float32)
    for o in range(3):
        for dz in range(D_out):
            for dy in range(H_out):
                for dx in range(W_out):
                    oc = ((o * D_out + dz) * H_out + dy) * W_out + dx
                    conv_bias[oc] = conv_b[o]
                    for kz in range(3):
                        z = 2 * dz + kz                              # no depth padding
                        for ky in range(3):
                            y = min(max(2 * dy + ky - 2, 0), H - 1)  # replicate pad
                            for kx in range(3):
                                xw = min(max(2 * dx + kx - 2, 0), W - 1)
                                ic = (z * H + y) * W + xw
                                conv_m[ic, oc] += conv_w[o, kz, ky, kx]

    pos = jax.random.normal(ks[2], (num_patches + 1, dim), jnp.float32)
    cls = jax.random.normal(ks[3], (1, dim), jnp.float32)

    ones_d = jnp.ones((dim,), jnp.float32)
    zeros_d = jnp.zeros((dim,), jnp.float32)
    # packed global E-width vectors: [conv_b, ln0_g, ln0_b]
    gE = jnp.stack([jnp.asarray(conv_bias),
                    jnp.ones((E,), jnp.float32),
                    jnp.zeros((E,), jnp.float32)], axis=0)
    # packed global dim-width vectors: [b_emb, ln1_g, ln1_b, cls_token+pos0, fin_g, fin_b]
    gD = jnp.stack([nrm(ks[5], (dim,), 0.02), ones_d, zeros_d,
                    cls[0] + pos[0], ones_d, zeros_d], axis=0)
    # packed per-layer dim-width vectors: [a_ln_g, a_ln_b, o_b, f_ln_g, f_ln_b, ff_b2]
    lvec = jnp.stack([jnp.ones((depth, dim), jnp.float32),
                      jnp.zeros((depth, dim), jnp.float32),
                      nrm(ks[8], (depth, dim), 0.02),
                      jnp.ones((depth, dim), jnp.float32),
                      jnp.zeros((depth, dim), jnp.float32),
                      nrm(ks[12], (depth, dim), 0.02)], axis=1)       # (depth, 6, dim)

    params = {
        "conv_m": jnp.asarray(conv_m).astype(bf16),
        "gE": gE,
        "w_emb": nrm(ks[4], (E, dim)).astype(bf16),
        "gD": gD,
        "pos_tok": pos[1:num_patches + 1],                            # (N, dim)
        # fused to_qkv; columns HEAD-MAJOR, per head ordered [q | k | v].  (A PyTorch
        # checkpoint's [q-heads | k-heads | v-heads] columns would be permuted to this
        # layout on the host.)
        "w_qkv": nrm(ks[6], (depth, dim, 3 * inner)).astype(bf16),
        "o_w": nrm(ks[7], (depth, inner, dim)).astype(bf16),
        "ff_w1": nrm(ks[9], (depth, dim, mlp_dim)).astype(bf16),
        "ff_b1": nrm(ks[10], (depth, 1, mlp_dim), 0.02),
        "ff_w2": nrm(ks[11], (depth, mlp_dim, dim)).astype(bf16),
        "lvec": lvec,
    }
    return params


_INVARIANT = ["conv_m", "gE", "w_emb", "gD", "pos_tok"]          # constant across the grid
_PER_LAYER = ["w_qkv", "o_w", "ff_w1", "ff_w2", "lvec", "ff_b1"]  # streamed along the depth axis


def spectral_transformer_forward(img, params, *, spe_patch_size, depth, heads,
                                 dim_head, pool="mean", batch_tile=16):
    B, C, H, W = img.shape
    assert C % spe_patch_size == 0
    N = C // spe_patch_size                       # num spectral patches
    P_in = spe_patch_size * H * W
    dim = params["gD"].shape[-1]
    S = N + 1
    Sp = max(8, ((S + 7) // 8) * 8)               # sequence padded to a sublane multiple

    # Rearrange('b (c1 c2) h w -> b c1 (c2 h w)') — per-patch flattened spectral cube.
    x = img.reshape(B, N, P_in)

    # Batch tile: fatten the matmul M dimension (Bt*Sp rows) but keep >= 2 batch grid
    # steps so the "parallel" axis shards across both v7x TensorCores and the pipeline
    # has something to overlap.
    max_bt = max(1, min(batch_tile, B // 2)) if B > 1 else 1
    Bt = 1
    for cand in range(max_bt, 0, -1):
        if B % cand == 0:
            Bt = cand
            break

    kernel = functools.partial(spectral_transformer_kernel,
                               heads=heads, dim_head=dim_head, pool=pool)

    # TODO(synk): mark the grid-invariant params single-buffered (pl.Buffered(1)) once
    # that pipeline_mode is verified for pallas_call; they are not re-fetched across grid
    # steps (constant index_map) but are still double-buffered in VMEM by default.
    def invariant(arr):
        nd = arr.ndim
        return pl.BlockSpec(arr.shape, lambda b, d, _n=nd: (0,) * _n)

    def per_layer(arr):
        nd = arr.ndim
        return pl.BlockSpec((1,) + arr.shape[1:],
                            lambda b, d, _n=nd: (d,) + (0,) * (_n - 1))

    in_specs = ([pl.BlockSpec((Bt, N, P_in), lambda b, d: (b, 0, 0))]
                + [invariant(params[k]) for k in _INVARIANT]
                + [per_layer(params[k]) for k in _PER_LAYER])
    # TODO(synk): a lane-dense (B, dim) output layout is a further (minor) win once dim grows;
    # kept as (B, 1, dim) so the block equals the full trailing dims on every generation.
    out_spec = pl.BlockSpec((Bt, 1, dim), lambda b, d: (b, 0, 0))

    out = pl.pallas_call(
        kernel,
        out_shape=jax.ShapeDtypeStruct((B, 1, dim), jnp.float32),
        grid_spec=pltpu.PrefetchScalarGridSpec(
            num_scalar_prefetch=0,
            grid=(B // Bt, depth),        # depth streams per-layer weights ("arbitrary")
            in_specs=in_specs,
            out_specs=out_spec,
            scratch_shapes=[pltpu.VMEM((Bt, Sp, dim), jnp.float32)],
        ),
        compiler_params=pltpu.CompilerParams(
            dimension_semantics=("parallel", "arbitrary"),
            vmem_limit_bytes=48 * 1024 * 1024),
    )(x, *[params[k] for k in _INVARIANT], *[params[k] for k in _PER_LAYER])
    return out[:, 0, :]                           # (B, dim) latent


if __name__ == "__main__":
    # Spectral_Transformer(image_size=8, spe_patch_size=4, channels=32, dim=32,
    #                      depth=2, heads=2, dim_head=16, mlp_dim=64, pool='mean')
    B, C, H, W = 2, 32, 8, 8
    spe_patch_size = 4
    dim, depth, heads, dim_head, mlp_dim = 32, 2, 2, 16, 64
    num_patches = C // spe_patch_size

    key = jax.random.PRNGKey(0)
    k_img, k_par = jax.random.split(key)
    img = jax.random.normal(k_img, (B, C, H, W), jnp.float32)
    params = init_params(
        k_par, spe_patch_size=spe_patch_size, H=H, W=W, dim=dim, depth=depth,
        heads=heads, dim_head=dim_head, mlp_dim=mlp_dim, num_patches=num_patches)

    out = spectral_transformer_forward(
        img, params, spe_patch_size=spe_patch_size,
        depth=depth, heads=heads, dim_head=dim_head, pool="mean")
    out = jax.block_until_ready(out)

    assert out.shape == (B, dim), out.shape
    assert bool(jnp.all(jnp.isfinite(out)))
    print("KERNEL_OK")
</pallas_src>

<mosaic_0001>
module attributes {stable_mosaic.version = 11 : i64} {
  func.func @spectral_transformer_kernel(%arg0: i32, %arg1: i32, %arg2: memref<1x8x256xf32, #tpu.memory_space<vmem>>, %arg3: memref<256x75xbf16, #tpu.memory_space<vmem>>, %arg4: memref<3x75xf32, #tpu.memory_space<vmem>>, %arg5: memref<75x32xbf16, #tpu.memory_space<vmem>>, %arg6: memref<6x32xf32, #tpu.memory_space<vmem>>, %arg7: memref<8x32xf32, #tpu.memory_space<vmem>>, %arg8: memref<1x32x96xbf16, #tpu.memory_space<vmem>>, %arg9: memref<1x32x32xbf16, #tpu.memory_space<vmem>>, %arg10: memref<1x32x64xbf16, #tpu.memory_space<vmem>>, %arg11: memref<1x64x32xbf16, #tpu.memory_space<vmem>>, %arg12: memref<1x6x32xf32, #tpu.memory_space<vmem>>, %arg13: memref<1x1x64xf32, #tpu.memory_space<vmem>>, %arg14: memref<1x1x32xf32, #tpu.memory_space<vmem>>, %arg15: memref<1x16x32xf32, #tpu.memory_space<vmem>>) attributes {dimension_semantics = [#tpu.dimension_semantics<parallel>, #tpu.dimension_semantics<arbitrary>], iteration_bounds = array<i64: 2, 2>, scalar_prefetch = 0 : i64, scratch_operands = 1 : i64, tpu.core_type = #tpu.core_type<tc>, window_params = [{transform_indices = @transform_0, window_bounds = array<i64: 1, 8, 256>}, {pipeline_mode = #tpu.pipeline_mode<synchronous>, transform_indices = @transform_1, window_bounds = array<i64: 256, 75>}, {pipeline_mode = #tpu.pipeline_mode<synchronous>, transform_indices = @transform_2, window_bounds = array<i64: 3, 75>}, {pipeline_mode = #tpu.pipeline_mode<synchronous>, transform_indices = @transform_3, window_bounds = array<i64: 75, 32>}, {pipeline_mode = #tpu.pipeline_mode<synchronous>, transform_indices = @transform_4, window_bounds = array<i64: 6, 32>}, {pipeline_mode = #tpu.pipeline_mode<synchronous>, transform_indices = @transform_5, window_bounds = array<i64: 8, 32>}, {transform_indices = @transform_6, window_bounds = array<i64: 1, 32, 96>}, {transform_indices = @transform_7, window_bounds = array<i64: 1, 32, 32>}, {transform_indices = @transform_8, window_bounds = array<i64: 1, 32, 64>}, {transform_indices = @transform_9, window_bounds = array<i64: 1, 64, 32>}, {transform_indices = @transform_10, window_bounds = array<i64: 1, 6, 32>}, {transform_indices = @transform_11, window_bounds = array<i64: 1, 1, 64>}, {transform_indices = @transform_12, window_bounds = array<i64: 1, 1, 32>}]} {
    %c0_i32 = arith.constant 0 : i32
    %0 = arith.cmpi eq, %arg1, %c0_i32 : i32
    %1 = arith.extui %0 : i1 to i32
    %c0_i32_0 = arith.constant 0 : i32
    %2 = arith.cmpi ne, %1, %c0_i32_0 : i32
    scf.if %2 {
      %c0_59 = arith.constant 0 : index
      %c0_60 = arith.constant 0 : index
      %c0_61 = arith.constant 0 : index
      %143 = vector.load %arg2[%c0_59, %c0_60, %c0_61] : memref<1x8x256xf32, #tpu.memory_space<vmem>>, vector<1x8x256xf32>
      %144 = vector.shape_cast %143 : vector<1x8x256xf32> to vector<8x256xf32>
      %145 = arith.truncf %144 : vector<8x256xf32> to vector<8x256xbf16>
      %c0_62 = arith.constant 0 : index
      %c0_63 = arith.constant 0 : index
      %146 = vector.load %arg3[%c0_62, %c0_63] : memref<256x75xbf16, #tpu.memory_space<vmem>>, vector<256x75xbf16>
      %cst_64 = arith.constant dense<0.000000e+00> : vector<8x75xf32>
      %147 = tpu.matmul %145, %146, %cst_64 {dimension_numbers = #tpu.dot_dimension_numbers<[1], [0], [0], [1], [0, 0, 1, 1], [], []>} : vector<8x256xbf16>, vector<256x75xbf16>, vector<8x75xf32> -> vector<8x75xf32>
      %c0_65 = arith.constant 0 : index
      %c0_66 = arith.constant 0 : index
      %148 = vector.load %arg4[%c0_65, %c0_66] : memref<3x75xf32, #tpu.memory_space<vmem>>, vector<1x75xf32>
      %149 = vector.broadcast %148 : vector<1x75xf32> to vector<8x75xf32>
      %150 = arith.addf %147, %149 : vector<8x75xf32>
      %cst_67 = arith.constant 0.000000e+00 : f32
      %151 = vector.broadcast %cst_67 : f32 to vector<8x75xf32>
      %152 = arith.maximumf %150, %151 : vector<8x75xf32>
      %c1_68 = arith.constant 1 : index
      %c0_69 = arith.constant 0 : index
      %153 = vector.load %arg4[%c1_68, %c0_69] : memref<3x75xf32, #tpu.memory_space<vmem>>, vector<1x75xf32>
      %c2_70 = arith.constant 2 : index
      %c0_71 = arith.constant 0 : index
      %154 = vector.load %arg4[%c2_70, %c0_71] : memref<3x75xf32, #tpu.memory_space<vmem>>, vector<1x75xf32>
      %cst_72 = arith.constant dense<0.000000e+00> : vector<8xf32>
      %155 = vector.multi_reduction <add>, %152, %cst_72 [1] : vector<8x75xf32> to vector<8xf32>
      %156 = vector.shape_cast %155 : vector<8xf32> to vector<8x1xf32>
      %cst_73 = arith.constant 7.500000e+01 : f32
      %157 = vector.broadcast %cst_73 : f32 to vector<8x1xf32>
      %158 = arith.divf %156, %157 : vector<8x1xf32>
      %159 = vector.broadcast %158 : vector<8x1xf32> to vector<8x75xf32>
      %160 = arith.subf %152, %159 : vector<8x75xf32>
      %161 = arith.mulf %160, %160 : vector<8x75xf32>
      %cst_74 = arith.constant dense<0.000000e+00> : vector<8xf32>
      %162 = vector.multi_reduction <add>, %161, %cst_74 [1] : vector<8x75xf32> to vector<8xf32>
      %163 = vector.shape_cast %162 : vector<8xf32> to vector<8x1xf32>
      %cst_75 = arith.constant 7.500000e+01 : f32
      %164 = vector.broadcast %cst_75 : f32 to vector<8x1xf32>
      %165 = arith.divf %163, %164 : vector<8x1xf32>
      %166 = vector.broadcast %158 : vector<8x1xf32> to vector<8x75xf32>
      %167 = arith.subf %152, %166 : vector<8x75xf32>
      %cst_76 = arith.constant 9.99999974E-6 : f32
      %168 = vector.broadcast %cst_76 : f32 to vector<8x1xf32>
      %169 = arith.addf %165, %168 : vector<8x1xf32>
      %170 = math.rsqrt %169 : vector<8x1xf32>
      %171 = vector.broadcast %170 : vector<8x1xf32> to vector<8x75xf32>
      %172 = arith.mulf %167, %171 : vector<8x75xf32>
      %173 = vector.broadcast %153 : vector<1x75xf32> to vector<8x75xf32>
      %174 = arith.mulf %172, %173 : vector<8x75xf32>
      %175 = vector.broadcast %154 : vector<1x75xf32> to vector<8x75xf32>
      %176 = arith.addf %174, %175 : vector<8x75xf32>
      %177 = arith.truncf %176 : vector<8x75xf32> to vector<8x75xbf16>
      %c0_77 = arith.constant 0 : index
      %c0_78 = arith.constant 0 : index
      %178 = vector.load %arg5[%c0_77, %c0_78] : memref<75x32xbf16, #tpu.memory_space<vmem>>, vector<75x32xbf16>
      %cst_79 = arith.constant dense<0.000000e+00> : vector<8x32xf32>
      %179 = tpu.matmul %177, %178, %cst_79 {dimension_numbers = #tpu.dot_dimension_numbers<[1], [0], [0], [1], [0, 0, 1, 1], [], []>} : vector<8x75xbf16>, vector<75x32xbf16>, vector<8x32xf32> -> vector<8x32xf32>
      %c0_80 = arith.constant 0 : index
      %c0_81 = arith.constant 0 : index
      %180 = vector.load %arg6[%c0_80, %c0_81] : memref<6x32xf32, #tpu.memory_space<vmem>>, vector<1x32xf32>
      %181 = vector.broadcast %180 : vector<1x32xf32> to vector<8x32xf32>
      %182 = arith.addf %179, %181 : vector<8x32xf32>
      %c1_82 = arith.constant 1 : index
      %c0_83 = arith.constant 0 : index
      %183 = vector.load %arg6[%c1_82, %c0_83] : memref<6x32xf32, #tpu.memory_space<vmem>>, vector<1x32xf32>
      %c2_84 = arith.constant 2 : index
      %c0_85 = arith.constant 0 : index
      %184 = vector.load %arg6[%c2_84, %c0_85] : memref<6x32xf32, #tpu.memory_space<vmem>>, vector<1x32xf32>
      %cst_86 = arith.constant dense<0.000000e+00> : vector<8xf32>
      %185 = vector.multi_reduction <add>, %182, %cst_86 [1] : vector<8x32xf32> to vector<8xf32>
      %186 = vector.shape_cast %185 : vector<8xf32> to vector<8x1xf32>
      %cst_87 = arith.constant 3.200000e+01 : f32
      %187 = vector.broadcast %cst_87 : f32 to vector<8x1xf32>
      %188 = arith.divf %186, %187 : vector<8x1xf32>
      %189 = vector.broadcast %188 : vector<8x1xf32> to vector<8x32xf32>
      %190 = arith.subf %182, %189 : vector<8x32xf32>
      %191 = arith.mulf %190, %190 : vector<8x32xf32>
      %cst_88 = arith.constant dense<0.000000e+00> : vector<8xf32>
      %192 = vector.multi_reduction <add>, %191, %cst_88 [1] : vector<8x32xf32> to vector<8xf32>
      %193 = vector.shape_cast %192 : vector<8xf32> to vector<8x1xf32>
      %cst_89 = arith.constant 3.200000e+01 : f32
      %194 = vector.broadcast %cst_89 : f32 to vector<8x1xf32>
      %195 = arith.divf %193, %194 : vector<8x1xf32>
      %196 = vector.broadcast %188 : vector<8x1xf32> to vector<8x32xf32>
      %197 = arith.subf %182, %196 : vector<8x32xf32>
      %cst_90 = arith.constant 9.99999974E-6 : f32
      %198 = vector.broadcast %cst_90 : f32 to vector<8x1xf32>
      %199 = arith.addf %195, %198 : vector<8x1xf32>
      %200 = math.rsqrt %199 : vector<8x1xf32>
      %201 = vector.broadcast %200 : vector<8x1xf32> to vector<8x32xf32>
      %202 = arith.mulf %197, %201 : vector<8x32xf32>
      %203 = vector.broadcast %183 : vector<1x32xf32> to vector<8x32xf32>
      %204 = arith.mulf %202, %203 : vector<8x32xf32>
      %205 = vector.broadcast %184 : vector<1x32xf32> to vector<8x32xf32>
      %206 = arith.addf %204, %205 : vector<8x32xf32>
      %207 = vector.shape_cast %206 : vector<8x32xf32> to vector<1x8x32xf32>
      %c0_91 = arith.constant 0 : index
      %c0_92 = arith.constant 0 : index
      %208 = vector.load %arg7[%c0_91, %c0_92] : memref<8x32xf32, #tpu.memory_space<vmem>>, vector<8x32xf32>
      %209 = vector.shape_cast %208 : vector<8x32xf32> to vector<1x8x32xf32>
      %210 = arith.addf %207, %209 : vector<1x8x32xf32>
      %cst_93 = arith.constant 0.000000e+00 : f32
      %211 = vector.broadcast %cst_93 : f32 to vector<1x8x32xf32>
      %c0_94 = arith.constant 0 : index
      %c8 = arith.constant 8 : index
      %c0_95 = arith.constant 0 : index
      %212 = vector.load %arg15[%c0_94, %c8, %c0_95] : memref<1x16x32xf32, #tpu.memory_space<vmem>>, vector<1x8x32xf32>
      tpu.vector_store %arg15[%c0_94, %c8, %c0_95], %211 {strides = array<i32>} : memref<1x16x32xf32, #tpu.memory_space<vmem>>, vector<1x8x32xf32>,
      %c0_96 = arith.constant 0 : index
      %c0_97 = arith.constant 0 : index
      %c0_98 = arith.constant 0 : index
      %213 = vector.load %arg15[%c0_96, %c0_97, %c0_98] : memref<1x16x32xf32, #tpu.memory_space<vmem>>, vector<1x8x32xf32>
      tpu.vector_store %arg15[%c0_96, %c0_97, %c0_98], %210 {strides = array<i32>} : memref<1x16x32xf32, #tpu.memory_space<vmem>>, vector<1x8x32xf32>,
      %c3_99 = arith.constant 3 : index
      %c0_100 = arith.constant 0 : index
      %214 = vector.load %arg6[%c3_99, %c0_100] : memref<6x32xf32, #tpu.memory_space<vmem>>, vector<1x32xf32>
      %215 = vector.shape_cast %214 : vector<1x32xf32> to vector<1x1x32xf32>
      %c0_101 = arith.constant 0 : index
      %c8_102 = arith.constant 8 : index
      %c0_103 = arith.constant 0 : index
      %216 = vector.load %arg15[%c0_101, %c8_102, %c0_103] : memref<1x16x32xf32, #tpu.memory_space<vmem>>, vector<1x1x32xf32>
      tpu.vector_store %arg15[%c0_101, %c8_102, %c0_103], %215 {strides = array<i32>} : memref<1x16x32xf32, #tpu.memory_space<vmem>>, vector<1x1x32xf32>,
    } else {
    }
    %3 = tpu.iota {dimensions = array<i32: 1>} : vector<16x16xi32>
    %c9_i32 = arith.constant 9 : i32
    %4 = vector.broadcast %c9_i32 : i32 to vector<16x16xi32>
    %5 = arith.cmpi slt, %3, %4 : vector<16x16xi32>
    %cst = arith.constant 0.000000e+00 : f32
    %cst_1 = arith.constant -1.000000e+30 : f32
    %6 = vector.broadcast %cst : f32 to vector<16x16xf32>
    %7 = vector.broadcast %cst_1 : f32 to vector<16x16xf32>
    %8 = arith.select %5, %6, %7 : vector<16x16xi1>, vector<16x16xf32>
    %c0 = arith.constant 0 : index
    %c0_2 = arith.constant 0 : index
    %c0_3 = arith.constant 0 : index
    %9 = vector.load %arg12[%c0, %c0_2, %c0_3] : memref<1x6x32xf32, #tpu.memory_space<vmem>>, vector<1x1x32xf32>
    %10 = vector.shape_cast %9 : vector<1x1x32xf32> to vector<1x32xf32>
    %c0_4 = arith.constant 0 : index
    %c1 = arith.constant 1 : index
    %c0_5 = arith.constant 0 : index
    %11 = vector.load %arg12[%c0_4, %c1, %c0_5] : memref<1x6x32xf32, #tpu.memory_space<vmem>>, vector<1x1x32xf32>
    %12 = vector.shape_cast %11 : vector<1x1x32xf32> to vector<1x32xf32>
    %c0_6 = arith.constant 0 : index
    %c2 = arith.constant 2 : index
    %c0_7 = arith.constant 0 : index
    %13 = vector.load %arg12[%c0_6, %c2, %c0_7] : memref<1x6x32xf32, #tpu.memory_space<vmem>>, vector<1x1x32xf32>
    %14 = vector.shape_cast %13 : vector<1x1x32xf32> to vector<1x32xf32>
    %c0_8 = arith.constant 0 : index
    %c3 = arith.constant 3 : index
    %c0_9 = arith.constant 0 : index
    %15 = vector.load %arg12[%c0_8, %c3, %c0_9] : memref<1x6x32xf32, #tpu.memory_space<vmem>>, vector<1x1x32xf32>
    %16 = vector.shape_cast %15 : vector<1x1x32xf32> to vector<1x32xf32>
    %c0_10 = arith.constant 0 : index
    %c4 = arith.constant 4 : index
    %c0_11 = arith.constant 0 : index
    %17 = vector.load %arg12[%c0_10, %c4, %c0_11] : memref<1x6x32xf32, #tpu.memory_space<vmem>>, vector<1x1x32xf32>
    %18 = vector.shape_cast %17 : vector<1x1x32xf32> to vector<1x32xf32>
    %c0_12 = arith.constant 0 : index
    %c5 = arith.constant 5 : index
    %c0_13 = arith.constant 0 : index
    %19 = vector.load %arg12[%c0_12, %c5, %c0_13] : memref<1x6x32xf32, #tpu.memory_space<vmem>>, vector<1x1x32xf32>
    %20 = vector.shape_cast %19 : vector<1x1x32xf32> to vector<1x32xf32>
    %c0_14 = arith.constant 0 : index
    %c0_15 = arith.constant 0 : index
    %c0_16 = arith.constant 0 : index
    %21 = vector.load %arg15[%c0_14, %c0_15, %c0_16] : memref<1x16x32xf32, #tpu.memory_space<vmem>>, vector<1x16x32xf32>
    %22 = vector.shape_cast %21 : vector<1x16x32xf32> to vector<16x32xf32>
    %cst_17 = arith.constant dense<0.000000e+00> : vector<16xf32>
    %23 = vector.multi_reduction <add>, %22, %cst_17 [1] : vector<16x32xf32> to vector<16xf32>
    %24 = vector.shape_cast %23 : vector<16xf32> to vector<16x1xf32>
    %cst_18 = arith.constant 3.200000e+01 : f32
    %25 = vector.broadcast %cst_18 : f32 to vector<16x1xf32>
    %26 = arith.divf %24, %25 : vector<16x1xf32>
    %27 = vector.broadcast %26 : vector<16x1xf32> to vector<16x32xf32>
    %28 = arith.subf %22, %27 : vector<16x32xf32>
    %29 = arith.mulf %28, %28 : vector<16x32xf32>
    %cst_19 = arith.constant dense<0.000000e+00> : vector<16xf32>
    %30 = vector.multi_reduction <add>, %29, %cst_19 [1] : vector<16x32xf32> to vector<16xf32>
    %31 = vector.shape_cast %30 : vector<16xf32> to vector<16x1xf32>
    %cst_20 = arith.constant 3.200000e+01 : f32
    %32 = vector.broadcast %cst_20 : f32 to vector<16x1xf32>
    %33 = arith.divf %31, %32 : vector<16x1xf32>
    %34 = vector.broadcast %26 : vector<16x1xf32> to vector<16x32xf32>
    %35 = arith.subf %22, %34 : vector<16x32xf32>
    %cst_21 = arith.constant 9.99999974E-6 : f32
    %36 = vector.broadcast %cst_21 : f32 to vector<16x1xf32>
    %37 = arith.addf %33, %36 : vector<16x1xf32>
    %38 = math.rsqrt %37 : vector<16x1xf32>
    %39 = vector.broadcast %38 : vector<16x1xf32> to vector<16x32xf32>
    %40 = arith.mulf %35, %39 : vector<16x32xf32>
    %41 = vector.broadcast %10 : vector<1x32xf32> to vector<16x32xf32>
    %42 = arith.mulf %40, %41 : vector<16x32xf32>
    %43 = vector.broadcast %12 : vector<1x32xf32> to vector<16x32xf32>
    %44 = arith.addf %42, %43 : vector<16x32xf32>
    %45 = arith.truncf %44 : vector<16x32xf32> to vector<16x32xbf16>
    %c0_22 = arith.constant 0 : index
    %c0_23 = arith.constant 0 : index
    %c0_24 = arith.constant 0 : index
    %46 = vector.load %arg8[%c0_22, %c0_23, %c0_24] : memref<1x32x96xbf16, #tpu.memory_space<vmem>>, vector<1x32x96xbf16>
    %47 = vector.shape_cast %46 : vector<1x32x96xbf16> to vector<32x96xbf16>
    %cst_25 = arith.constant dense<0.000000e+00> : vector<16x96xf32>
    %48 = tpu.matmul %45, %47, %cst_25 {dimension_numbers = #tpu.dot_dimension_numbers<[1], [0], [0], [1], [0, 0, 1, 1], [], []>} : vector<16x32xbf16>, vector<32x96xbf16>, vector<16x96xf32> -> vector<16x96xf32>
    %49 = vector.shape_cast %48 : vector<16x96xf32> to vector<1x16x96xf32>
    %50 = vector.extract_strided_slice %49 {offsets = [0, 0, 0], sizes = [1, 16, 48], strides = [1, 1, 1]} : vector<1x16x96xf32> to vector<1x16x48xf32>
    %51 = vector.extract_strided_slice %49 {offsets = [0, 0, 48], sizes = [1, 16, 48], strides = [1, 1, 1]} : vector<1x16x96xf32> to vector<1x16x48xf32>
    %52 = tpu.concatenate %50, %51 in 0 : vector<1x16x48xf32>, vector<1x16x48xf32> -> vector<2x16x48xf32>
    %53 = vector.extract_strided_slice %52 {offsets = [0, 0, 0], sizes = [2, 16, 16], strides = [1, 1, 1]} : vector<2x16x48xf32> to vector<2x16x16xf32>
    %54 = vector.extract_strided_slice %52 {offsets = [0, 0, 16], sizes = [2, 16, 16], strides = [1, 1, 1]} : vector<2x16x48xf32> to vector<2x16x16xf32>
    %55 = vector.extract_strided_slice %52 {offsets = [0, 0, 32], sizes = [2, 16, 16], strides = [1, 1, 1]} : vector<2x16x48xf32> to vector<2x16x16xf32>
    %56 = arith.truncf %53 : vector<2x16x16xf32> to vector<2x16x16xbf16>
    %57 = arith.truncf %54 : vector<2x16x16xf32> to vector<2x16x16xbf16>
    "tpu.trace_start"() <{level = 10 : i32, message = "bqd,bkd->bqk"}> : () -> ()
    %cst_26 = arith.constant dense<0.000000e+00> : vector<2x16x16xf32>
    %58 = tpu.matmul %56, %57, %cst_26 {dimension_numbers = #tpu.dot_dimension_numbers<[2], [2], [1], [1], [0, 0, 0, 1, 1, 1], [0], [0]>} : vector<2x16x16xbf16>, vector<2x16x16xbf16>, vector<2x16x16xf32> -> vector<2x16x16xf32>
    "tpu.trace_stop"() : () -> ()
    %cst_27 = arith.constant 2.500000e-01 : f32
    %59 = vector.broadcast %cst_27 : f32 to vector<2x16x16xf32>
    %60 = arith.mulf %58, %59 : vector<2x16x16xf32>
    %61 = vector.shape_cast %8 : vector<16x16xf32> to vector<1x16x16xf32>
    %62 = vector.broadcast %61 : vector<1x16x16xf32> to vector<2x16x16xf32>
    %63 = arith.addf %60, %62 : vector<2x16x16xf32>
    %cst_28 = arith.constant dense<0xFF800000> : vector<2x16xf32>
    %64 = vector.multi_reduction <maximumf>, %63, %cst_28 [2] : vector<2x16x16xf32> to vector<2x16xf32>
    %65 = vector.shape_cast %64 : vector<2x16xf32> to vector<2x16x1xf32>
    %66 = vector.broadcast %65 : vector<2x16x1xf32> to vector<2x16x16xf32>
    %67 = arith.subf %63, %66 : vector<2x16x16xf32>
    %68 = math.exp %67 : vector<2x16x16xf32>
    %cst_29 = arith.constant dense<0.000000e+00> : vector<2x16xf32>
    %69 = vector.multi_reduction <add>, %68, %cst_29 [2] : vector<2x16x16xf32> to vector<2x16xf32>
    %70 = vector.shape_cast %69 : vector<2x16xf32> to vector<2x16x1xf32>
    %71 = tpu.reciprocal %70 {approx = true} : vector<2x16x1xf32> -> vector<2x16x1xf32>
    %72 = vector.broadcast %71 : vector<2x16x1xf32> to vector<2x16x16xf32>
    %73 = arith.mulf %68, %72 : vector<2x16x16xf32>
    %74 = arith.truncf %73 : vector<2x16x16xf32> to vector<2x16x16xbf16>
    %75 = arith.truncf %55 : vector<2x16x16xf32> to vector<2x16x16xbf16>
    "tpu.trace_start"() <{level = 10 : i32, message = "bqk,bkd->bqd"}> : () -> ()
    %cst_30 = arith.constant dense<0.000000e+00> : vector<2x16x16xf32>
    %76 = tpu.matmul %74, %75, %cst_30 {dimension_numbers = #tpu.dot_dimension_numbers<[2], [1], [1], [2], [0, 0, 0, 1, 1, 2], [0], [0]>} : vector<2x16x16xbf16>, vector<2x16x16xbf16>, vector<2x16x16xf32> -> vector<2x16x16xf32>
    "tpu.trace_stop"() : () -> ()
    %77 = vector.extract_strided_slice %76 {offsets = [0, 0, 0], sizes = [1, 16, 16], strides = [1, 1, 1]} : vector<2x16x16xf32> to vector<1x16x16xf32>
    %78 = vector.extract_strided_slice %76 {offsets = [1, 0, 0], sizes = [1, 16, 16], strides = [1, 1, 1]} : vector<2x16x16xf32> to vector<1x16x16xf32>
    %79 = tpu.concatenate %77, %78 in 2 : vector<1x16x16xf32>, vector<1x16x16xf32> -> vector<1x16x32xf32>
    %80 = vector.shape_cast %79 : vector<1x16x32xf32> to vector<16x32xf32>
    %81 = arith.truncf %80 : vector<16x32xf32> to vector<16x32xbf16>
    %c0_31 = arith.constant 0 : index
    %c0_32 = arith.constant 0 : index
    %c0_33 = arith.constant 0 : index
    %82 = vector.load %arg9[%c0_31, %c0_32, %c0_33] : memref<1x32x32xbf16, #tpu.memory_space<vmem>>, vector<1x32x32xbf16>
    %83 = vector.shape_cast %82 : vector<1x32x32xbf16> to vector<32x32xbf16>
    %cst_34 = arith.constant dense<0.000000e+00> : vector<16x32xf32>
    %84 = tpu.matmul %81, %83, %cst_34 {dimension_numbers = #tpu.dot_dimension_numbers<[1], [0], [0], [1], [0, 0, 1, 1], [], []>} : vector<16x32xbf16>, vector<32x32xbf16>, vector<16x32xf32> -> vector<16x32xf32>
    %85 = vector.broadcast %14 : vector<1x32xf32> to vector<16x32xf32>
    %86 = arith.addf %84, %85 : vector<16x32xf32>
    %87 = arith.addf %22, %86 : vector<16x32xf32>
    %cst_35 = arith.constant dense<0.000000e+00> : vector<16xf32>
    %88 = vector.multi_reduction <add>, %87, %cst_35 [1] : vector<16x32xf32> to vector<16xf32>
    %89 = vector.shape_cast %88 : vector<16xf32> to vector<16x1xf32>
    %cst_36 = arith.constant 3.200000e+01 : f32
    %90 = vector.broadcast %cst_36 : f32 to vector<16x1xf32>
    %91 = arith.divf %89, %90 : vector<16x1xf32>
    %92 = vector.broadcast %91 : vector<16x1xf32> to vector<16x32xf32>
    %93 = arith.subf %87, %92 : vector<16x32xf32>
    %94 = arith.mulf %93, %93 : vector<16x32xf32>
    %cst_37 = arith.constant dense<0.000000e+00> : vector<16xf32>
    %95 = vector.multi_reduction <add>, %94, %cst_37 [1] : vector<16x32xf32> to vector<16xf32>
    %96 = vector.shape_cast %95 : vector<16xf32> to vector<16x1xf32>
    %cst_38 = arith.constant 3.200000e+01 : f32
    %97 = vector.broadcast %cst_38 : f32 to vector<16x1xf32>
    %98 = arith.divf %96, %97 : vector<16x1xf32>
    %99 = vector.broadcast %91 : vector<16x1xf32> to vector<16x32xf32>
    %100 = arith.subf %87, %99 : vector<16x32xf32>
    %cst_39 = arith.constant 9.99999974E-6 : f32
    %101 = vector.broadcast %cst_39 : f32 to vector<16x1xf32>
    %102 = arith.addf %98, %101 : vector<16x1xf32>
    %103 = math.rsqrt %102 : vector<16x1xf32>
    %104 = vector.broadcast %103 : vector<16x1xf32> to vector<16x32xf32>
    %105 = arith.mulf %100, %104 : vector<16x32xf32>
    %106 = vector.broadcast %16 : vector<1x32xf32> to vector<16x32xf32>
    %107 = arith.mulf %105, %106 : vector<16x32xf32>
    %108 = vector.broadcast %18 : vector<1x32xf32> to vector<16x32xf32>
    %109 = arith.addf %107, %108 : vector<16x32xf32>
    %110 = arith.truncf %109 : vector<16x32xf32> to vector<16x32xbf16>
    %c0_40 = arith.constant 0 : index
    %c0_41 = arith.constant 0 : index
    %c0_42 = arith.constant 0 : index
    %111 = vector.load %arg10[%c0_40, %c0_41, %c0_42] : memref<1x32x64xbf16, #tpu.memory_space<vmem>>, vector<1x32x64xbf16>
    %112 = vector.shape_cast %111 : vector<1x32x64xbf16> to vector<32x64xbf16>
    %cst_43 = arith.constant dense<0.000000e+00> : vector<16x64xf32>
    %113 = tpu.matmul %110, %112, %cst_43 {dimension_numbers = #tpu.dot_dimension_numbers<[1], [0], [0], [1], [0, 0, 1, 1], [], []>} : vector<16x32xbf16>, vector<32x64xbf16>, vector<16x64xf32> -> vector<16x64xf32>
    %c0_44 = arith.constant 0 : index
    %c0_45 = arith.constant 0 : index
    %c0_46 = arith.constant 0 : index
    %114 = vector.load %arg13[%c0_44, %c0_45, %c0_46] : memref<1x1x64xf32, #tpu.memory_space<vmem>>, vector<1x1x64xf32>
    %115 = vector.shape_cast %114 : vector<1x1x64xf32> to vector<1x64xf32>
    %116 = vector.broadcast %115 : vector<1x64xf32> to vector<16x64xf32>
    %117 = arith.addf %113, %116 : vector<16x64xf32>
    %118 = arith.mulf %117, %117 : vector<16x64xf32>
    %119 = arith.mulf %117, %118 : vector<16x64xf32>
    %cst_47 = arith.constant 4.471500e-02 : f32
    %120 = vector.broadcast %cst_47 : f32 to vector<16x64xf32>
    %121 = arith.mulf %120, %119 : vector<16x64xf32>
    %122 = arith.addf %117, %121 : vector<16x64xf32>
    %cst_48 = arith.constant 0.797884583 : f32
    %123 = vector.broadcast %cst_48 : f32 to vector<16x64xf32>
    %124 = arith.mulf %123, %122 : vector<16x64xf32>
    %125 = math.tanh %124 : vector<16x64xf32>
    %cst_49 = arith.constant 1.000000e+00 : f32
    %126 = vector.broadcast %cst_49 : f32 to vector<16x64xf32>
    %127 = arith.addf %126, %125 : vector<16x64xf32>
    %cst_50 = arith.constant 5.000000e-01 : f32
    %128 = vector.broadcast %cst_50 : f32 to vector<16x64xf32>
    %129 = arith.mulf %128, %127 : vector<16x64xf32>
    %130 = arith.mulf %117, %129 : vector<16x64xf32>
    %131 = arith.truncf %130 : vector<16x64xf32> to vector<16x64xbf16>
    %c0_51 = arith.constant 0 : index
    %c0_52 = arith.constant 0 : index
    %c0_53 = arith.constant 0 : index
    %132 = vector.load %arg11[%c0_51, %c0_52, %c0_53] : memref<1x64x32xbf16, #tpu.memory_space<vmem>>, vector<1x64x32xbf16>
    %133 = vector.shape_cast %132 : vector<1x64x32xbf16> to vector<64x32xbf16>
    %cst_54 = arith.constant dense<0.000000e+00> : vector<16x32xf32>
    %134 = tpu.matmul %131, %133, %cst_54 {dimension_numbers = #tpu.dot_dimension_numbers<[1], [0], [0], [1], [0, 0, 1, 1], [], []>} : vector<16x64xbf16>, vector<64x32xbf16>, vector<16x32xf32> -> vector<16x32xf32>
    %135 = vector.broadcast %20 : vector<1x32xf32> to vector<16x32xf32>
    %136 = arith.addf %134, %135 : vector<16x32xf32>
    %137 = arith.addf %87, %136 : vector<16x32xf32>
    %138 = vector.shape_cast %137 : vector<16x32xf32> to vector<1x16x32xf32>
    %c0_55 = arith.constant 0 : index
    %c0_56 = arith.constant 0 : index
    %c0_57 = arith.constant 0 : index
    %139 = vector.load %arg15[%c0_55, %c0_56, %c0_57] : memref<1x16x32xf32, #tpu.memory_space<vmem>>, vector<1x16x32xf32>
    tpu.vector_store %arg15[%c0_55, %c0_56, %c0_57], %138 {strides = array<i32>} : memref<1x16x32xf32, #tpu.memory_space<vmem>>, vector<1x16x32xf32>,
    %c1_i32 = arith.constant 1 : i32
    %140 = arith.cmpi eq, %arg1, %c1_i32 : i32
    %141 = arith.extui %140 : i1 to i32
    %c0_i32_58 = arith.constant 0 : i32
    %142 = arith.cmpi ne, %141, %c0_i32_58 : i32
    scf.if %142 {
      %c4_59 = arith.constant 4 : index
      %c0_60 = arith.constant 0 : index
      %143 = vector.load %arg6[%c4_59, %c0_60] : memref<6x32xf32, #tpu.memory_space<vmem>>, vector<1x32xf32>
      %c5_61 = arith.constant 5 : index
      %c0_62 = arith.constant 0 : index
      %144 = vector.load %arg6[%c5_61, %c0_62] : memref<6x32xf32, #tpu.memory_space<vmem>>, vector<1x32xf32>
      %cst_63 = arith.constant dense<0.000000e+00> : vector<16xf32>
      %145 = vector.multi_reduction <add>, %137, %cst_63 [1] : vector<16x32xf32> to vector<16xf32>
      %146 = vector.shape_cast %145 : vector<16xf32> to vector<16x1xf32>
      %cst_64 = arith.constant 3.200000e+01 : f32
      %147 = vector.broadcast %cst_64 : f32 to vector<16x1xf32>
      %148 = arith.divf %146, %147 : vector<16x1xf32>
      %149 = vector.broadcast %148 : vector<16x1xf32> to vector<16x32xf32>
      %150 = arith.subf %137, %149 : vector<16x32xf32>
      %151 = arith.mulf %150, %150 : vector<16x32xf32>
      %cst_65 = arith.constant dense<0.000000e+00> : vector<16xf32>
      %152 = vector.multi_reduction <add>, %151, %cst_65 [1] : vector<16x32xf32> to vector<16xf32>
      %153 = vector.shape_cast %152 : vector<16xf32> to vector<16x1xf32>
      %cst_66 = arith.constant 3.200000e+01 : f32
      %154 = vector.broadcast %cst_66 : f32 to vector<16x1xf32>
      %155 = arith.divf %153, %154 : vector<16x1xf32>
      %156 = vector.broadcast %148 : vector<16x1xf32> to vector<16x32xf32>
      %157 = arith.subf %137, %156 : vector<16x32xf32>
      %cst_67 = arith.constant 9.99999974E-6 : f32
      %158 = vector.broadcast %cst_67 : f32 to vector<16x1xf32>
      %159 = arith.addf %155, %158 : vector<16x1xf32>
      %160 = math.rsqrt %159 : vector<16x1xf32>
      %161 = vector.broadcast %160 : vector<16x1xf32> to vector<16x32xf32>
      %162 = arith.mulf %157, %161 : vector<16x32xf32>
      %163 = vector.broadcast %143 : vector<1x32xf32> to vector<16x32xf32>
      %164 = arith.mulf %162, %163 : vector<16x32xf32>
      %165 = vector.broadcast %144 : vector<1x32xf32> to vector<16x32xf32>
      %166 = arith.addf %164, %165 : vector<16x32xf32>
      %167 = vector.shape_cast %166 : vector<16x32xf32> to vector<1x16x32xf32>
      %168 = tpu.iota {dimensions = array<i32: 0>} : vector<16x1xi32>
      %c9_i32_68 = arith.constant 9 : i32
      %169 = vector.broadcast %c9_i32_68 : i32 to vector<16x1xi32>
      %170 = arith.cmpi slt, %168, %169 : vector<16x1xi32>
      %171 = arith.extui %170 : vector<16x1xi1> to vector<16x1xi32>
      %172 = arith.sitofp %171 : vector<16x1xi32> to vector<16x1xf32>
      %173 = vector.shape_cast %172 : vector<16x1xf32> to vector<1x16x1xf32>
      %174 = vector.broadcast %173 : vector<1x16x1xf32> to vector<1x16x32xf32>
      %175 = arith.mulf %167, %174 : vector<1x16x32xf32>
      %cst_69 = arith.constant dense<0.000000e+00> : vector<1x32xf32>
      %176 = vector.multi_reduction <add>, %175, %cst_69 [1] : vector<1x16x32xf32> to vector<1x32xf32>
      %177 = vector.shape_cast %176 : vector<1x32xf32> to vector<1x1x32xf32>
      %cst_70 = arith.constant 0.111111112 : f32
      %178 = vector.broadcast %cst_70 : f32 to vector<1x1x32xf32>
      %179 = arith.mulf %177, %178 : vector<1x1x32xf32>
      %c0_71 = arith.constant 0 : index
      %c0_72 = arith.constant 0 : index
      %c0_73 = arith.constant 0 : index
      %180 = vector.load %arg14[%c0_71, %c0_72, %c0_73] : memref<1x1x32xf32, #tpu.memory_space<vmem>>, vector<1x1x32xf32>
      tpu.vector_store %arg14[%c0_71, %c0_72, %c0_73], %179 {strides = array<i32>} : memref<1x1x32xf32, #tpu.memory_space<vmem>>, vector<1x1x32xf32>,
    } else {
    }
    return
  }
  func.func @transform_0(%arg0: i32, %arg1: i32) -> (i32, i32, i32) {
    %c0_i32 = arith.constant 0 : i32
    %c0_i32_0 = arith.constant 0 : i32
    %c0_i32_1 = arith.constant 0 : i32
    return %arg0, %c0_i32, %c0_i32_0 : i32, i32, i32
  }
  func.func @transform_1(%arg0: i32, %arg1: i32) -> (i32, i32) {
    %c0_i32 = arith.constant 0 : i32
    %c0_i32_0 = arith.constant 0 : i32
    %c0_i32_1 = arith.constant 0 : i32
    return %c0_i32, %c0_i32_0 : i32, i32
  }
  func.func @transform_2(%arg0: i32, %arg1: i32) -> (i32, i32) {
    %c0_i32 = arith.constant 0 : i32
    %c0_i32_0 = arith.constant 0 : i32
    %c0_i32_1 = arith.constant 0 : i32
    return %c0_i32, %c0_i32_0 : i32, i32
  }
  func.func @transform_3(%arg0: i32, %arg1: i32) -> (i32, i32) {
    %c0_i32 = arith.constant 0 : i32
    %c0_i32_0 = arith.constant 0 : i32
    %c0_i32_1 = arith.constant 0 : i32
    return %c0_i32, %c0_i32_0 : i32, i32
  }
  func.func @transform_4(%arg0: i32, %arg1: i32) -> (i32, i32) {
    %c0_i32 = arith.constant 0 : i32
    %c0_i32_0 = arith.constant 0 : i32
    %c0_i32_1 = arith.constant 0 : i32
    return %c0_i32, %c0_i32_0 : i32, i32
  }
  func.func @transform_5(%arg0: i32, %arg1: i32) -> (i32, i32) {
    %c0_i32 = arith.constant 0 : i32
    %c0_i32_0 = arith.constant 0 : i32
    %c0_i32_1 = arith.constant 0 : i32
    return %c0_i32, %c0_i32_0 : i32, i32
  }
  func.func @transform_6(%arg0: i32, %arg1: i32) -> (i32, i32, i32) {
    %c0_i32 = arith.constant 0 : i32
    %c0_i32_0 = arith.constant 0 : i32
    %c0_i32_1 = arith.constant 0 : i32
    return %arg1, %c0_i32, %c0_i32_0 : i32, i32, i32
  }
  func.func @transform_7(%arg0: i32, %arg1: i32) -> (i32, i32, i32) {
    %c0_i32 = arith.constant 0 : i32
    %c0_i32_0 = arith.constant 0 : i32
    %c0_i32_1 = arith.constant 0 : i32
    return %arg1, %c0_i32, %c0_i32_0 : i32, i32, i32
  }
  func.func @transform_8(%arg0: i32, %arg1: i32) -> (i32, i32, i32) {
    %c0_i32 = arith.constant 0 : i32
    %c0_i32_0 = arith.constant 0 : i32
    %c0_i32_1 = arith.constant 0 : i32
    return %arg1, %c0_i32, %c0_i32_0 : i32, i32, i32
  }
  func.func @transform_9(%arg0: i32, %arg1: i32) -> (i32, i32, i32) {
    %c0_i32 = arith.constant 0 : i32
    %c0_i32_0 = arith.constant 0 : i32
    %c0_i32_1 = arith.constant 0 : i32
    return %arg1, %c0_i32, %c0_i32_0 : i32, i32, i32
  }
  func.func @transform_10(%arg0: i32, %arg1: i32) -> (i32, i32, i32) {
    %c0_i32 = arith.constant 0 : i32
    %c0_i32_0 = arith.constant 0 : i32
    %c0_i32_1 = arith.constant 0 : i32
    return %arg1, %c0_i32, %c0_i32_0 : i32, i32, i32
  }
  func.func @transform_11(%arg0: i32, %arg1: i32) -> (i32, i32, i32) {
    %c0_i32 = arith.constant 0 : i32
    %c0_i32_0 = arith.constant 0 : i32
    %c0_i32_1 = arith.constant 0 : i32
    return %arg1, %c0_i32, %c0_i32_0 : i32, i32, i32
  }
  func.func @transform_12(%arg0: i32, %arg1: i32) -> (i32, i32, i32) {
    %c0_i32 = arith.constant 0 : i32
    %c0_i32_0 = arith.constant 0 : i32
    %c0_i32_1 = arith.constant 0 : i32
    return %arg0, %c0_i32, %c0_i32_0 : i32, i32, i32
  }
}

</mosaic_0001>

<bundles_post_ra>
// kernel: tpu_custom_call.1
= control target key start
LH: loop header
LB: loop body
LE: loop exit
PB: predicated region body
PF: predicated region fallthrough
CT: control target
= control target key end

     0   :  { %s2670_s0 = inlined_call_operand.vmem [shape: f32[2,8,256], index: 0, kind: input, shape index: {}]   ;;  %s2671_s1 = inlined_call_operand.vmem [shape: bf16[256,75], index: 1, kind: input, shape index: {}]   ;;  %s2672_s2 = inlined_call_operand.vmem [shape: f32[3,75], index: 2, kind: input, shape index: {}]   ;;  %s2673_s3 = inlined_call_operand.vmem [shape: bf16[75,32], index: 3, kind: input, shape index: {}]   ;;  %s2674_s4 = inlined_call_operand.vmem [shape: f32[6,32], index: 4, kind: input, shape index: {}]   ;;  %s2675_s5 = inlined_call_operand.vmem [shape: f32[8,32], index: 5, kind: input, shape index: {}]   ;;  %s2676_s6 = inlined_call_operand.vmem [shape: bf16[2,32,96], index: 6, kind: input, shape index: {}]   ;;  %s2677_s7 = inlined_call_operand.vmem [shape: bf16[2,32,32], index: 7, kind: input, shape index: {}]   ;;  %s2678_s8 = inlined_call_operand.vmem [shape: bf16[2,32,64], index: 8, kind: input, shape index: {}]   ;;  %s2679_s9 = inlined_call_operand.vmem [shape: bf16[2,64,32], index: 9, kind: input, shape index: {}]   ;;  %s2680_s10 = inlined_call_operand.vmem [shape: f32[2,6,32], index: 10, kind: input, shape index: {}]   ;;  %s2681_s11 = inlined_call_operand.vmem [shape: f32[2,1,64], index: 11, kind: input, shape index: {}]   ;;  %s2682_s12 = inlined_call_operand.hbm [shape: f32[2,1,32], index: 12, kind: output, shape index: {}]  }
   0x1   :  { %2695 = sst [smem:[#allocation17_spill]] %s2670_s0 }
   0x2   :  { %2696 = sst [smem:[#allocation18_spill]] %s2676_s6 }
   0x3   :  { %2697 = sst [smem:[#allocation19_spill]] %s2677_s7 }
   0x4   :  { %2698 = sst [smem:[#allocation20_spill]] %s2682_s12 }
   0x5   :  { %17 = vsyncpa [#allocation4], 0 }
   0x6   :  { %19 = vsyncpa [#allocation4 + $0x1], 0  ;;  %s2283_s21 = smov 0   ;;  %s2285_s22 = smov 0  }
   0x7   :  { %s2287_s23 = smov 0   ;;  %s2289_s24 = smov 0  }
   0x8   :  { %s2291_s25 = smov 0   ;;  %s2293_s26 = smov 0  }
   0x9   :  { %s2295_s27 = smov 0   ;;  %s2297_s28 = smov 0  }
   0xa LB: > { %2699 = sst [smem:[#allocation6_spill]] %s2176_s21  ;;  %s1747_s29 = sadd.s32 4294967295, %s2204_s28   ;;  %s2204_s28 = sphi %s2297_s28, %s25_s28   ;;  %s2200_s27 = sphi %s2295_s27, %s2732_s27   ;;  %s2196_s26 = sphi %s2293_s26, %s2728_s26   ;;  %s2192_s25 = sphi %s2291_s25, %s2727_s25   ;;  %s2188_s24 = sphi %s2289_s24, %s2726_s24   ;;  %s2184_s23 = sphi %s2287_s23, %s2725_s23   ;;  %s2180_s22 = sphi %s2285_s22, %s2731_s22   ;;  %s2176_s21 = sphi %s2283_s21, %s2730_s21  }
   0xb   : > { %2700 = sst [smem:[#allocation7_spill]] %s2184_s23  ;;  %s1748_s30 = sadd.s32 4294967294, %s2204_s28  }
   0xc   : > { %2701 = sst [smem:[#allocation8_spill]] %s2192_s25  ;;  %s34_s13 = sadd.s32 1, %s2196_s26 }
   0xd   : > { %2702 = sst [smem:[#allocation9_spill]] %s2196_s26  ;;  %p35_p0 = scmp.ge.s32.totalorder %s34_s13, 2 }
   0xe   : > { %2703 = sst [smem:[#allocation10_spill]] %s2200_s27  ;;  %s37_s14 = sadd.s32 1, %s2200_s27 }
   0xf   : > { %2704 = sst [smem:[#allocation11_spill]] %s2204_s28  ;;  %p341_p1 = scmp.ne.s32.totalorder %s2184_s23, %s2180_s22 }
  0x10   : > { %p342_p2 = scmp.eq.s32.totalorder %s1747_s29, 3  ;;  %s2734_s13 = smov (%p35_p0, %s34_s13), 0 }
  0x11   : > { %2705 = sst [smem:[#allocation12_spill]] %s2734_s13  ;;  %s2736_s14 = smov (!%p35_p0, %s37_s14), %s2200_s27 }
  0x12   : > { %p2332_p3 = por %p342_p2, %p341_p1  ;;  %p347_p4 = scmp.ne.s32.totalorder %s2180_s22, %s2176_s21 }
  0x13   : > { %p39_p5 = scmp.ge.s32.totalorder %s2736_s14, 2  ;;  %p348_p6 = scmp.eq.s32.totalorder %s1748_s30, 3 }
  0x14   : > { %s2706_s15 = scalar_select %p2332_p3, 1, 0 }
  0x15   : > { %p1751_p7 = scmp.ge.s32.totalorder %s2204_s28, 1  ;;  %p434_p8 = scmp.lt.s32.totalorder %s2204_s28, 5 }
  0x16   : > { %2707 = sst [smem:[#allocation13_spill]] %s2706_s15  ;;  %s2738_s14 = smov (%p39_p5, %s2736_s14), 0 }
  0x17   : > { %2708 = sst [smem:[#allocation14_spill]] %s2738_s14  ;;  %p2342_p9 = por %p348_p6, %p347_p4 }
  0x18   : > { %p435_p10 = pnand %p1751_p7, %p434_p8  ;;  %s328_s17 = ssub.s32 %s2200_s27, %s2738_s14 }
  0x19   : > { %s2709_s16 = scalar_select %p2342_p9, 1, 0 }
  0x1a   : > { %s331_s18 = sadd.s32 1, %s2184_s23  ;;  %p329_p11 = scmp.eq.s32.totalorder %s328_s17, 0 }
  0x1b   : > { %2710 = sst [smem:[#allocation15_spill]] %s2709_s16  ;;  %438 = sbr.rel (%p435_p10) target bundleno = 3990 (0xf96), region = 68 }
  0x1c   : > { %s2350_s19 = scalar_select %p329_p11, %s2184_s23, %s331_s18  }
  0x1d   : > { %p502_p12 = scmp.lt.s32.totalorder (!%p435_p10), %s2192_s25, 1  ;;  %p507_p13 = scmp.lt.s32.totalorder (!%p435_p10), %s2188_s24, 1 }
  0x1e   : > { %2711 = sst [smem:[#allocation16_spill]] %s2350_s19  ;;  %p1763_p0 = scmp.ne.s32.totalorder (!%p435_p10), %s2188_s24, 0 }
  0x1f   : > { %s2712_s0 = sld [smem:[#allocation17_spill]] (!%p435_p10) }
  0x20   : > { %s503_s29 = scalar_select %p502_p12, %s2192_s25, 1 }
  0x21   : > { %s2357_s30 = scalar_select %p507_p13, %s2188_s24, 1 }
  0x22   : > { %s1824_s17 = sshll.u32 %s503_s29, 4  ;;  %s2713_s6 = sld [smem:[#allocation18_spill]] }
  0x23   : > { %s1825_s27 = sshll.u32 %s2357_s30, 4  ;;  %s2714_s7 = sld [smem:[#allocation19_spill]] }
  0x24   : > { %s2378_s29 = scalar_lea.vmem %s2678_s8, %s1825_s27  ;;  %s1828_s15 = sshll.u32 %s2357_s30, 5 }
  0x25   : > { %s2362_s13 = scalar_lea.vmem %s2712_s0, %s1824_s17  ;;  %s2384_s18 = scalar_lea.vmem %s2679_s9, %s1828_s15 }
  0x26   : > { %s1762_s0 = sshll.u32 %s2357_s30, 3  ;;  %s2715_s25 = sand.u32 1, %s2180_s22  }
  0x27   : > { %s2398_s12 = scalar_lea.vmem [#allocation3], %s2715_s25  ;;  %538 = sbr.rel (%p1763_p0) target bundleno = 1094 (0x446), region = 72 }
  0x28   : > { %s2368_s20 = scalar_lea.vmem %s2713_s6, %s1825_s27  ;;  %s2390_s6 = scalar_lea.vmem %s2680_s10, %s1762_s0 }
  0x29   : > { %s2373_s21 = scalar_lea.vmem %s2714_s7, %s1825_s27  ;;  %s533_s7 = scalar_lea.vmem %s2681_s11, %s2357_s30 }
  0x2c   : > { %v2035_v0 = vld [vmem:[%s2671_s1 + $0x78] sm:$0xff]   ;;  %v2037_v2 = vld [vmem:[%s2671_s1 + $0x70] sm:$0xff]   ;;  %v2039_v4 = vld [vmem:[%s2671_s1 + $0x68] sm:$0xff]   ;;  %vm719_vm0 = vcmask 613376   ;;  %vm792_vm1 = vcmask 1044480   ;;  %vm793_vm2 = vcmask 1045504  }
  0x2d   : > { %v2036_v1 = vld [vmem:[%s2671_s1 + $0x38] sm:$0xff]   ;;  %1829 = vmatprep.subr.bf16.mxu0 %v2035_v0  ;;  %v2038_v3 = vld [vmem:[%s2671_s1 + $0x30] sm:$0xff]   ;;  %v2040_v5 = vld [vmem:[%s2671_s1 + $0x28] sm:$0xff]   ;;  %v2206_v35 = vmov 65535   ;;  %v2207_v38 = vmov 0.0   ;;  %vm2208_vm3 = vmmov 0  }
  0x2e   : > { %1830 = vmatpush3.bf16.msra.mxu0 %v2036_v1  ;;  %v2041_v6 = vld [vmem:[%s2671_s1 + $0x60] sm:$0xff]   ;;  %v2043_v8 = vld [vmem:[%s2671_s1 + $0x58] sm:$0xff]   ;;  %v2045_v10 = vld [vmem:[%s2671_s1 + $0x50] sm:$0xff]   ;;  %v794_v36 = vsel %vm792_vm1, 4294967295, %v2206_v35  ;;  %1879 = vmatprep.subr.bf16.mxu1 %v2207_v38  ;;  %vm841_vm4 = vcmask 261120   ;;  %vm871_vm5 = vcmask 253952  }
  0x2f   : > { %1831 = vmatprep.subr.bf16.mxu0 %v2037_v2  ;;  %v2042_v7 = vld [vmem:[%s2671_s1 + $0x20] sm:$0xff]   ;;  %v2044_v9 = vld [vmem:[%s2671_s1 + $0x18] sm:$0xff]   ;;  %v540_v11 = vld [vmem:[%s2362_s13 + $0x8] sm:$0xff]  ;;  %v795_v37 = vsel %vm793_vm2, %v794_v36, 0  ;;  %1889 = vmatprep.mubr.msk.bf16.mxu1 %vm2208_vm3, %v2207_v38  ;;  %868 = vst.msk [vmem:[#allocation2 + $0x8] sm:$0xff] %vm841_vm4, %v2207_v38 }
  0x30   : > { %v2046_v12 = vld [vmem:[%s2671_s1 + $0x10] sm:$0xff]   ;;  %v542_v13 = vpack.c.bf16 %v540_v11, %v540_v11  ;;  %v2047_v14 = vld [vmem:[%s2671_s1 + $0x48] sm:$0xff]   ;;  %v2049_v16 = vld [vmem:[%s2671_s1 + $0x40] sm:$0xff]  }
  0x31   : > { %v2048_v15 = vld [vmem:[%s2671_s1 + $0x8] sm:$0xff]   ;;  %v2050_v17 = vld [vmem:[%s2671_s1] sm:$0xff]   ;;  %v2052_v40 = vld [vmem:[%s2673_s3 + $0x18] sm:$0xff]  }
  0x32   : > { %1832 = vmatpush3.bf16.msra.mxu0 %v2038_v3  ;;  %708 = vmatprep.mubr.bf16.mxu0 %v542_v13  ;;  %v539_v18 = vld [vmem:[%s2362_s13] sm:$0xff]  ;;  %v2053_v41 = vld [vmem:[%s2673_s3 + $0x10] sm:$0xff]   ;;  %v2054_v42 = vld [vmem:[%s2673_s3 + $0x8] sm:$0xff]  }
  0x33   : > { %1833 = vmatprep.subr.bf16.mxu0 %v2039_v4  ;;  %v541_v19 = vpack.c.bf16 %v539_v18, %v539_v18  ;;  %v1764_v22 = vld [vmem:[%s2672_s2] ss:$0 sm:$0xff]  ;;  %v1781_v48 = vld [vmem:[%s2672_s2 + $0x1] ss:$0 sm:$0xff]  ;;  %v1782_v50 = vld [vmem:[%s2672_s2 + $0x2] ss:$0 sm:$0xff] }
  0x34   : > { %v2051_v34 = vld [vmem:[%s2673_s3 + $0x20] sm:$0x3f]  }
  0x35   : > { %v797_v39 = vand.u32 %v2051_v34, %v795_v37  ;;  %v2055_v43 = vld [vmem:[%s2673_s3] sm:$0xff]  }
  0x36   : > { %1834 = vmatpush3.bf16.msra.mxu0 %v2040_v5  ;;  %v870_v54 = vld [vmem:[%s2674_s4 + $0x3] sm:$0x1]  ;;  %v1783_v55 = vld [vmem:[%s2674_s4] ss:$0 sm:$0xff] }
  0x37   : > { %1835 = vmatprep.subr.bf16.mxu0 %v2041_v6  ;;  %1880 = vmatpush3.bf16.msra.mxu1 %v797_v39  ;;  %872 = vst.msk [vmem:[#allocation2 + $0x8] sm:$0x1] %vm871_vm5, %v870_v54  ;;  %v866_v11 = vld [vmem:[%s2675_s5] sm:$0xff] }
  0x38   : > { %1881 = vmatprep.subr.bf16.mxu1 %v2207_v38 }
  0x3a   : > { %1836 = vmatpush3.bf16.msra.mxu0 %v2042_v7  ;;  %v1790_v7 = vld [vmem:[%s2674_s4 + $0x1] ss:$0 sm:$0xff] }
  0x3b   : > { %1837 = vmatprep.subr.bf16.mxu0 %v2043_v8  ;;  %1882 = vmatpush3.bf16.msra.mxu1 %v2052_v40 }
  0x3c   : > { %1883 = vmatprep.subr.bf16.mxu1 %v2207_v38 }
  0x3e   : > { %1838 = vmatpush3.bf16.msra.mxu0 %v2044_v9  ;;  %v1791_v9 = vld [vmem:[%s2674_s4 + $0x2] ss:$0 sm:$0xff] }
  0x3f   : > { %1839 = vmatprep.subr.bf16.mxu0 %v2045_v10  ;;  %1884 = vmatpush3.bf16.msra.mxu1 %v2053_v41 }
  0x40   : > { %1885 = vmatprep.subr.bf16.mxu1 %v2207_v38 }
  0x42   : > { %1840 = vmatpush3.bf16.msra.mxu0 %v2046_v12 }
  0x43   : > { %1841 = vmatprep.subr.bf16.mxu0 %v2047_v14  ;;  %1886 = vmatpush3.bf16.msra.mxu1 %v2054_v42 }
  0x44   : > { %1887 = vmatprep.subr.bf16.mxu1 %v2207_v38 }
  0x46   : > { %1842 = vmatpush3.bf16.msra.mxu0 %v2048_v15 }
  0x47   : > { %1843 = vmatprep.subr.bf16.mxu0 %v2049_v16  ;;  %1888 = vmatpush3.bf16.msra.mxu1 %v2055_v43 }
  0x4a   : > { %1844 = vmatpush3.bf16.msra.mxu0 %v2050_v17 }
  0x4d   : > { %709 = vmatmul.mubr.bf16.vlgmr.msra.gmra.mxu0 %v541_v19 }
 0x10d   : > { %v1845_v20 = vpop.f32.mrf.mxu0 }
 0x10f   : > { %v1846_v21 = vpop.f32.mrf.mxu0 }
 0x110   : > { %v1847_v23 = vadd.f32 %v1846_v21, %v1845_v20 }
 0x111   : > { %v1848_v24 = vpop.f32.mrf.mxu0 }
 0x112   : > { %v711_v25 = vadd.f32 %v1847_v23, %v1764_v22 }
 0x113   : > { %v1849_v26 = vpop.f32.mrf.mxu0 }
 0x114   : > { %v716_v27 = vmax.f32 %v711_v25, 0.0 }
 0x116   : > { %v720_v28 = vsel %vm719_vm0, %v716_v27, 0.0 }
 0x117   : > { %721 = vadd.xlane.f32.xlu0 %v720_v28 }
 0x1a0   : > { %v722_v29 = vpop.xlane.xlu0 %721 }
 0x1a1   : > { %v724_v30 = vmul.f32 0.013333334, %v722_v29 }
 0x1a3   : > { %v725_v31 = vsub.f32 %v716_v27, %v724_v30 }
 0x1a5   : > { %v726_v32 = vmul.f32 %v725_v31, %v725_v31 }
 0x1a7   : > { %v727_v33 = vsel %vm719_vm0, %v726_v32, 0.0 }
 0x1a8   : > { %728 = vadd.xlane.f32.xlu0 %v727_v33 }
 0x231   : > { %v729_v44 = vpop.xlane.xlu0 %728 }
 0x232   : > { %v730_v45 = vmul.f32 0.013333334, %v729_v44 }
 0x234   : > { %v731_v46 = vadd.f32 1e-05, %v730_v45 }
 0x236   : > { %2056 = vrsqrt.f32 %v731_v46 }
 0x243   : > { %v2057_v47 = vpop.eup %2056 }
 0x244   : > { %v733_v49 = vmul.f32 %v2057_v47, %v725_v31 }
 0x246   : > { %v738_v51 = vmul.f32 %v1781_v48, %v733_v49 }
 0x248   : > { %v743_v52 = vadd.f32 %v1782_v50, %v738_v51 }
 0x24a   : > { %v744_v53 = vpack.c.bf16 %v743_v52, %v743_v52 }
 0x24c   : > { %1890 = vmatmul.mubr.msk.bf16.vlgmr.msra.gmra.mxu1 %vm719_vm0, %v744_v53 }
 0x30c   : > { %v833_v56 = vpop.f32.mrf.mxu1 }
 0x30d   : > { %v834_v57 = vadd.f32 %v1783_v55, %v833_v56 }
 0x30e   : > { %v1891_v58 = vpop.f32.mrf.mxu1 }
 0x30f   : > { %v842_v59 = vsel %vm841_vm4, %v834_v57, 0.0 }
 0x310   : > { %843 = vadd.xlane.f32.xlu1 %v842_v59  ;;  %v836_v60 = vpop.f32.mrf.mxu1 }
 0x312   : > { %v1892_v61 = vpop.f32.mrf.mxu1 }
 0x399   : > { %v844_v62 = vpop.xlane.xlu1 %843 }
 0x39a   : > { %v846_v63 = vmul.f32 0.03125, %v844_v62 }
 0x39c   : > { %v847_v0 = vsub.f32 %v834_v57, %v846_v63 }
 0x39e   : > { %v848_v1 = vmul.f32 %v847_v0, %v847_v0 }
 0x3a0   : > { %v849_v2 = vsel %vm841_vm4, %v848_v1, 0.0 }
 0x3a1   : > { %850 = vadd.xlane.f32.xlu1 %v849_v2 }
 0x42a   : > { %v851_v3 = vpop.xlane.xlu1 %850 }
 0x42b   : > { %v852_v4 = vmul.f32 0.03125, %v851_v3 }
 0x42d   : > { %v853_v5 = vadd.f32 1e-05, %v852_v4 }
 0x42f   : > { %2058 = vrsqrt.f32 %v853_v5 }
 0x43c   : > { %v2059_v6 = vpop.eup %2058 }
 0x43d   : > { %v855_v8 = vmul.f32 %v2059_v6, %v847_v0 }
 0x43f   : > { %v860_v10 = vmul.f32 %v1790_v7, %v855_v8 }
 0x441   : > { %v865_v12 = vadd.f32 %v1791_v9, %v860_v10 }
 0x443   : > { %v867_v13 = vadd.f32 %v866_v11, %v865_v12 }
 0x445   : > { %869 = vst.msk [vmem:[#allocation2] sm:$0xff] %vm841_vm4, %v867_v13 }
 0x446 PF: > { %vm885_vm6 = vcmask 261120   ;;  %v2499_v15 = vld [vmem:[#allocation2 + $0x8] sm:$0xff]  ;;  %v2209_v29 = vmov 0.0   ;;  %vm2210_vm7 = vmmov 0   ;;  %v2071_v30 = vld [vmem:[%s2368_s20] sm:$0xff]   ;;  %s2212_s13 = smov 112   ;;  %v873_v62 = vlaneseq }
 0x447   : > { %v889_v17 = vsel %vm885_vm6, %v2499_v15, 0.0  ;;  %v2070_v28 = vld [vmem:[%s2368_s20 + $0x8] sm:$0xff]   ;;  %1893 = vmatprep.subr.bf16.mxu0 %v2209_v29  ;;  %1897 = vmatprep.mubr.msk.bf16.mxu0 %vm2210_vm7, %v2209_v29  ;;  %v1792_v39 = vld [vmem:[%s2390_s6] ss:$0 sm:$0xff]  ;;  %v1793_v43 = vld [vmem:[%s2390_s6 + $0x1] ss:$0 sm:$0xff] }
 0x448   : > { %1894 = vmatpush3.bf16.msra.mxu0 %v2070_v28  ;;  %1901 = vmatprep.subr.bf16.mxu1 %v2209_v29  ;;  %s2211_s20 = smov 80   ;;  %vm999_vm8 = vcmask 130048   ;;  %v874_v63 = vand.u32 127, %v873_v62  ;;  %v2213_v1 = vmov -1e+30   ;;  %s2214_s28 = smov 96  }
 0x449   : > { %1895 = vmatprep.subr.bf16.mxu0 %v2209_v29  ;;  %1903 = vmatprep.mubr.msk.bf16.mxu1 %vm2210_vm7, %v2209_v29  ;;  %s2215_s15 = smov 16   ;;  %vm1483_vm10 = vcmask 523264   ;;  %p1817_p1 = scmp.ne.s32.totalorder %s2188_s24, 1 }
 0x44a   : > { %vm875_vm9 = vcmp.lt.s32.totalorder %v874_v63, 9  ;;  %v2073_v63 = vld [vmem:[%s2373_s21] sm:$0xff]  }
 0x44b   : > { %v876_v2 = vsel %vm875_vm9, 0.0, %v2213_v1 }
 0x44c   : > { %v2497_v14 = vld [vmem:[#allocation2] sm:$0xff]  ;;  %1896 = vmatpush3.bf16.msra.mxu0 %v2071_v30 }
 0x44d   : > { %v886_v16 = vsel %vm885_vm6, %v2497_v14, 0.0  ;;  %1907 = vmatprep.subr.bf16.mxu0 %v2209_v29 }
 0x44e   : > { %887 = vadd.xlane.f32.xlu0 %v886_v16 }
 0x452   : > { %890 = vadd.xlane.f32.xlu0 %v889_v17 }
 0x4d7   : > { %v888_v18 = vpop.xlane.xlu0 %887 }
 0x4d8   : > { %v893_v19 = vmul.f32 0.03125, %v888_v18 }
 0x4da   : > { %v895_v20 = vsub.f32 %v2497_v14, %v893_v19 }
 0x4db   : > { %v891_v21 = vpop.xlane.xlu0 %890 }
 0x4dc   : > { %v894_v22 = vmul.f32 0.03125, %v891_v21  ;;  %v897_v23 = vmul.f32 %v895_v20, %v895_v20 }
 0x4de   : > { %v896_v24 = vsub.f32 %v2499_v15, %v894_v22  ;;  %v899_v25 = vsel %vm885_vm6, %v897_v23, 0.0 }
 0x4df   : > { %900 = vadd.xlane.f32.xlu1 %v899_v25 }
 0x4e0   : > { %v898_v26 = vmul.f32 %v896_v24, %v896_v24 }
 0x4e2   : > { %v902_v27 = vsel %vm885_vm6, %v898_v26, 0.0 }
 0x4e3   : > { %903 = vadd.xlane.f32.xlu1 %v902_v27 }
 0x568   : > { %v901_v31 = vpop.xlane.xlu1 %900 }
 0x569   : > { %v905_v32 = vmul.f32 0.03125, %v901_v31 }
 0x56b   : > { %v907_v33 = vadd.f32 1e-05, %v905_v32 }
 0x56c   : > { %v904_v34 = vpop.xlane.xlu1 %903 }
 0x56d   : > { %2080 = vrsqrt.f32 %v907_v33  ;;  %v906_v35 = vmul.f32 0.03125, %v904_v34 }
 0x56f   : > { %v908_v36 = vadd.f32 1e-05, %v906_v35 }
 0x571   : > { %2082 = vrsqrt.f32 %v908_v36 }
 0x57a   : > { %v2081_v37 = vpop.eup %2080 }
 0x57b   : > { %v911_v38 = vmul.f32 %v2081_v37, %v895_v20 }
 0x57d   : > { %v917_v42 = vmul.f32 %v1792_v39, %v911_v38 }
 0x57e   : > { %v2083_v40 = vpop.eup %2082 }
 0x57f   : > { %v912_v41 = vmul.f32 %v2083_v40, %v896_v24  ;;  %v923_v45 = vadd.f32 %v1793_v43, %v917_v42 }
 0x581   : > { %v918_v44 = vmul.f32 %v1792_v39, %v912_v41 }
 0x583   : > { %v924_v46 = vadd.f32 %v1793_v43, %v918_v44 }
 0x585   : > { %v925_v47 = vpack.c.bf16 %v924_v46, %v923_v45 }
 0x587   : > { %1898 = vmatmul.mubr.msk.bf16.vlgmr.msra.gmra.mxu0 %vm885_vm6, %v925_v47 }
 0x588   : > { %1909 = vmatprep.mubr.msk.bf16.mxu0 %vm2210_vm7, %v2209_v29 }
 0x647   : > { %v979_v48 = vpop.f32.mrf.mxu0 }
 0x649   : > { %v1899_v49 = vpop.f32.mrf.mxu0 }
 0x64b   : > { %v982_v50 = vpop.f32.mrf.mxu0 }
 0x64c   : > { %v2060_v51 = vpack.i.bf16 %v982_v50, %v979_v48  ;;  %v2524_v52 = vpack.c.bf16 %v982_v50, %v979_v48 }
 0x64d   : > { %v1900_v53 = vpop.f32.mrf.mxu0 }
 0x64e   : > { %2061 = vrot.lane.b32.xlu0 %v2060_v51, %s2211_s20 }
 0x6c0   : > { %v2062_v54 = vpop.permute.xlu0 %2061 }
 0x6c1   : > { %v2064_v55 = vunpack.i.h.bf16 %v2062_v54  ;;  %v2063_v56 = vunpack.i.l.bf16 %v2062_v54 }
 0x6c3   : > { %v2526_v57 = vpack.c.bf16 %v2064_v55, %v2063_v56 }
 0x6c5   : > { %1048 = vrot.lane.b32.xlu1 %v2526_v57, %s2212_s13 }
 0x6c9   : > { %997 = vrot.lane.b32.xlu1 %v2524_v52, %s2212_s13 }
 0x737   : > { %v1049_v58 = vpop.permute.xlu1 %1048 }
 0x738   : > { %v1054_v59 = vsel %vm999_vm8, %v1049_v58, 0 }
 0x739   : > { %1908 = vmatpush3.bf16.xpose.msra.mxu0 %v1054_v59 }
 0x73a   : > { %1919 = vmatprep.subr.bf16.mxu0 %v2209_v29 }
 0x73b   : > { %v998_v60 = vpop.permute.xlu1 %997 }
 0x73c   : > { %v1004_v61 = vsel %vm999_vm8, %v998_v60, 0 }
 0x73d   : > { %1902 = vmatpush3.bf16.xpose.msra.mxu1 %v1004_v61  ;;  %v2072_v61 = vld [vmem:[%s2373_s21 + $0x8] sm:$0xff]  }
 0x73e   : > { %1913 = vmatprep.subr.bf16.mxu1 %v2209_v29 }
 0x740   : > { %1910 = vmatmul.mubr.msk.bf16.vlgmr.msra.gmra.mxu0 %vm999_vm8, %v2526_v57 }
 0x741   : > { %1921 = vmatprep.mubr.msk.bf16.mxu0 %vm2210_vm7, %v2209_v29 }
 0x744   : > { %1904 = vmatmul.mubr.msk.bf16.vlgmr.msra.gmra.mxu1 %vm999_vm8, %v2524_v52 }
 0x745   : > { %1915 = vmatprep.mubr.msk.bf16.mxu1 %vm2210_vm7, %v2209_v29 }
 0x800   : > { %v1090_v0 = vpop.f32.mrf.mxu0 }
 0x801   : > { %v1099_v3 = vmul.f32 0.25, %v1090_v0 }
 0x802   : > { %v1911_v4 = vpop.f32.mrf.mxu0 }
 0x803   : > { %v1103_v5 = vadd.f32 %v1099_v3, %v876_v2 }
 0x804   : > { %v1040_v6 = vpop.f32.mrf.mxu1  ;;  %v1093_v7 = vpop.f32.mrf.mxu0 }
 0x805   : > { %v1097_v8 = vmul.f32 0.25, %v1040_v6  ;;  %v1100_v9 = vmul.f32 0.25, %v1093_v7  ;;  %v1111_v10 = vsel %vm999_vm8, %v1103_v5, -inf }
 0x806   : > { %v1905_v11 = vpop.f32.mrf.mxu1  ;;  %v1912_v12 = vpop.f32.mrf.mxu0  ;;  %1112 = vmax.xlane.f32.xlu1 %v1111_v10 }
 0x807   : > { %v1104_v13 = vadd.f32 %v1100_v9, %v876_v2  ;;  %v1101_v19 = vadd.f32 %v1097_v8, %v876_v2 }
 0x808   : > { %v1043_v16 = vpop.f32.mrf.mxu1 }
 0x809   : > { %v1098_v17 = vmul.f32 0.25, %v1043_v16  ;;  %v1114_v18 = vsel %vm999_vm8, %v1104_v13, -inf  ;;  %v1105_v21 = vsel %vm999_vm8, %v1101_v19, -inf }
 0x80a   : > { %v1906_v20 = vpop.f32.mrf.mxu1  ;;  %1115 = vmax.xlane.f32.xlu0 %v1114_v18 }
 0x80b   : > { %v1102_v22 = vadd.f32 %v1098_v17, %v876_v2  ;;  %v1801_v17 = vld [vmem:[%s2390_s6 + $0x2] ss:$0 sm:$0xff] }
 0x80d   : > { %v1108_v23 = vsel %vm999_vm8, %v1102_v22, -inf }
 0x80e   : > { %1106 = vmax.xlane.f32.xlu0 %v1105_v21 }
 0x812   : > { %1109 = vmax.xlane.f32.xlu0 %v1108_v23 }
 0x88f   : > { %v1113_v24 = vpop.xlane.xlu1 %1112 }
 0x890   : > { %v1119_v25 = vsub.f32 %v1103_v5, %v1113_v24 }
 0x892   : > { %v1125_v26 = vmul.f32 1.442695, %v1119_v25 }
 0x893   : > { %v1116_v27 = vpop.xlane.xlu0 %1115 }
 0x894   : > { %2084 = vpow2.f32 %v1125_v26  ;;  %v1120_v28 = vsub.f32 %v1104_v13, %v1116_v27 }
 0x896   : > { %v1127_v30 = vmul.f32 1.442695, %v1120_v28 }
 0x897   : > { %v1107_v31 = vpop.xlane.xlu0 %1106 }
 0x898   : > { %2086 = vpow2.f32 %v1127_v30  ;;  %v1117_v32 = vsub.f32 %v1101_v19, %v1107_v31 }
 0x89a   : > { %v1121_v33 = vmul.f32 1.442695, %v1117_v32 }
 0x89b   : > { %v1110_v34 = vpop.xlane.xlu0 %1109 }
 0x89c   : > { %2088 = vpow2.f32 %v1121_v33  ;;  %v1118_v35 = vsub.f32 %v1102_v22, %v1110_v34 }
 0x89e   : > { %v1123_v36 = vmul.f32 1.442695, %v1118_v35 }
 0x8a0   : > { %2090 = vpow2.f32 %v1123_v36 }
 0x8a1   : > { %v2085_v37 = vpop.eup %2084 }
 0x8a2   : > { %v1135_v38 = vsel %vm999_vm8, %v2085_v37, 0.0 }
 0x8a3   : > { %1136 = vadd.xlane.f32.xlu1 %v1135_v38  ;;  %v2075_v38 = vld [vmem:[%s2378_s29] sm:$0xff]  }
 0x8a5   : > { %v2087_v39 = vpop.eup %2086 }
 0x8a6   : > { %v1138_v40 = vsel %vm999_vm8, %v2087_v39, 0.0 }
 0x8a7   : > { %1139 = vadd.xlane.f32.xlu0 %v1138_v40 }
 0x8a9   : > { %v2089_v41 = vpop.eup %2088 }
 0x8aa   : > { %v1129_v42 = vsel %vm999_vm8, %v2089_v41, 0.0 }
 0x8ab   : > { %1130 = vadd.xlane.f32.xlu0 %v1129_v42 }
 0x8ad   : > { %v2091_v43 = vpop.eup %2090 }
 0x8ae   : > { %v1132_v44 = vsel %vm999_vm8, %v2091_v43, 0.0 }
 0x8af   : > { %1133 = vadd.xlane.f32.xlu0 %v1132_v44 }
 0x8b4   : > { %1198 = vrot.lane.b32.xlu1 %v2526_v57, %s2214_s28 }
 0x8c5   : > { %1151 = vrot.lane.b32.xlu0 %v2524_v52, %s2214_s28 }
 0x92c   : > { %v1137_v45 = vpop.xlane.xlu1 %1136 }
 0x92d   : > { %2092 = vrcp.f32 %v1137_v45 }
 0x930   : > { %v1199_v46 = vpop.permute.xlu1 %1198  ;;  %v1140_v47 = vpop.xlane.xlu0 %1139 }
 0x931   : > { %2094 = vrcp.f32 %v1140_v47  ;;  %1920 = vmatpush3.bf16.msra.mxu0 %v1199_v46  ;;  %v1805_v47 = vld [vmem:[%s2390_s6 + $0x3] ss:$0 sm:$0xff] }
 0x932   : > { %1933 = vmatprep.subr.bf16.mxu0 %v2209_v29 }
 0x934   : > { %v1131_v48 = vpop.xlane.xlu0 %1130 }
 0x935   : > { %2096 = vrcp.f32 %v1131_v48 }
 0x938   : > { %v1134_v49 = vpop.xlane.xlu0 %1133 }
 0x939   : > { %2098 = vrcp.f32 %v1134_v49 }
 0x93a   : > { %v2093_v50 = vpop.eup %2092 }
 0x93b   : > { %v1147_v52 = vmul.f32 %v2093_v50, %v2085_v37  ;;  %v2074_v37 = vld [vmem:[%s2378_s29 + $0x8] sm:$0xff]  }
 0x93c   : > { %v1152_v51 = vpop.permute.xlu0 %1151 }
 0x93d   : > { %1914 = vmatpush3.bf16.msra.mxu1 %v1152_v51  ;;  %v1806_v51 = vld [vmem:[%s2390_s6 + $0x4] ss:$0 sm:$0xff] }
 0x93e   : > { %v2095_v53 = vpop.eup %2094  ;;  %1925 = vmatprep.subr.bf16.mxu1 %v2209_v29 }
 0x93f   : > { %v1148_v54 = vmul.f32 %v2095_v53, %v2087_v39 }
 0x941   : > { %v1150_v55 = vpack.c.bf16 %v1148_v54, %v1147_v52 }
 0x942   : > { %v2097_v56 = vpop.eup %2096 }
 0x943   : > { %1922 = vmatmul.mubr.msk.bf16.vlgmr.msra.gmra.mxu0 %vm999_vm8, %v1150_v55  ;;  %v1145_v58 = vmul.f32 %v2097_v56, %v2089_v41  ;;  %v2076_v56 = vld [vmem:[%s2384_s18 + $0x18] sm:$0xff]  }
 0x944   : > { %1937 = vmatprep.mubr.msk.bf16.mxu0 %vm2210_vm7, %v2209_v29  ;;  %1934 = vmatpush3.bf16.msra.mxu0 %v2074_v37 }
 0x945   : > { %1935 = vmatprep.subr.bf16.mxu0 %v2209_v29 }
 0x946   : > { %v2099_v57 = vpop.eup %2098 }
 0x947   : > { %v1146_v59 = vmul.f32 %v2099_v57, %v2091_v43  ;;  %v2077_v57 = vld [vmem:[%s2384_s18 + $0x10] sm:$0xff]  }
 0x948   : > { %1936 = vmatpush3.bf16.msra.mxu0 %v2075_v38 }
 0x949   : > { %v1149_v60 = vpack.c.bf16 %v1146_v59, %v1145_v58  ;;  %v2078_v58 = vld [vmem:[%s2384_s18 + $0x8] sm:$0xff]   ;;  %v2079_v59 = vld [vmem:[%s2384_s18] sm:$0xff]  }
 0x94b   : > { %1916 = vmatmul.mubr.msk.bf16.vlgmr.msra.gmra.mxu1 %vm999_vm8, %v1149_v60  ;;  %v1807_v60 = vld [vmem:[%s533_s7] ss:$0 sm:$0xff] }
 0x94c   : > { %1929 = vmatprep.mubr.msk.bf16.mxu1 %vm2210_vm7, %v2209_v29  ;;  %1926 = vmatpush3.bf16.msra.mxu1 %v2072_v61 }
 0x94d   : > { %1927 = vmatprep.subr.bf16.mxu1 %v2209_v29 }
 0x950   : > { %1928 = vmatpush3.bf16.msra.mxu1 %v2073_v63 }
 0x951   : > { %1941 = vmatprep.subr.bf16.mxu1 %v2209_v29 }
 0xa03   : > { %v1238_v0 = vpop.f32.mrf.mxu0 }
 0xa05   : > { %v1923_v1 = vpop.f32.mrf.mxu0 }
 0xa07   : > { %v1241_v2 = vpop.f32.mrf.mxu0 }
 0xa08   : > { %v2065_v3 = vpack.i.bf16 %v1241_v2, %v1238_v0 }
 0xa09   : > { %v1924_v4 = vpop.f32.mrf.mxu0 }
 0xa0a   : > { %2066 = vrot.lane.b32.xlu1 %v2065_v3, %s2215_s15 }
 0xa0b   : > { %v1191_v5 = vpop.f32.mrf.mxu1 }
 0xa0d   : > { %v1917_v6 = vpop.f32.mrf.mxu1 }
 0xa0f   : > { %v1194_v7 = vpop.f32.mrf.mxu1 }
 0xa11   : > { %v1918_v8 = vpop.f32.mrf.mxu1 }
 0xa7c   : > { %v2067_v9 = vpop.permute.xlu1 %2066 }
 0xa7d   : > { %v2069_v10 = vunpack.i.h.bf16 %v2067_v9  ;;  %v2068_v11 = vunpack.i.l.bf16 %v2067_v9 }
 0xa7f   : > { %v1253_v12 = vsel %vm999_vm8, %v1191_v5, %v2068_v11  ;;  %v1254_v13 = vsel %vm999_vm8, %v1194_v7, %v2069_v10 }
 0xa80   : > { %v1255_v16 = vpack.c.bf16 %v1254_v13, %v1253_v12 }
 0xa82   : > { %1930 = vmatmul.mubr.msk.bf16.vlgmr.msra.gmra.mxu1 %vm885_vm6, %v1255_v16 }
 0xa83   : > { %1949 = vmatprep.mubr.msk.bf16.mxu1 %vm2210_vm7, %v2209_v29  ;;  %1942 = vmatpush3.bf16.msra.mxu1 %v2076_v56 }
 0xa84   : > { %1943 = vmatprep.subr.bf16.mxu1 %v2209_v29 }
 0xa87   : > { %1944 = vmatpush3.bf16.msra.mxu1 %v2077_v57 }
 0xa88   : > { %1945 = vmatprep.subr.bf16.mxu1 %v2209_v29 }
 0xa8b   : > { %1946 = vmatpush3.bf16.msra.mxu1 %v2078_v58 }
 0xa8c   : > { %1947 = vmatprep.subr.bf16.mxu1 %v2209_v29 }
 0xa8f   : > { %1948 = vmatpush3.bf16.msra.mxu1 %v2079_v59 }
 0xb42   : > { %v1313_v18 = vpop.f32.mrf.mxu1 }
 0xb43   : > { %v1314_v19 = vadd.f32 %v1801_v17, %v1313_v18 }
 0xb44   : > { %v1931_v20 = vpop.f32.mrf.mxu1 }
 0xb45   : > { %v2572_v21 = vadd.f32 %v1314_v19, %v2497_v14 }
 0xb46   : > { %v1316_v22 = vpop.f32.mrf.mxu1 }
 0xb47   : > { %v1317_v23 = vadd.f32 %v1801_v17, %v1316_v22  ;;  %v1322_v24 = vsel %vm885_vm6, %v2572_v21, 0.0 }
 0xb48   : > { %1323 = vadd.xlane.f32.xlu1 %v1322_v24  ;;  %v1932_v25 = vpop.f32.mrf.mxu1 }
 0xb49   : > { %v2577_v26 = vadd.f32 %v1317_v23, %v2499_v15  ;;  %v1811_v25 = vld [vmem:[%s2390_s6 + $0x5] ss:$0 sm:$0xff] }
 0xb4b   : > { %v1325_v27 = vsel %vm885_vm6, %v2577_v26, 0.0 }
 0xb4c   : > { %1326 = vadd.xlane.f32.xlu0 %v1325_v27 }
 0xbd1   : > { %v1324_v28 = vpop.xlane.xlu1 %1323 }
 0xbd2   : > { %v1328_v30 = vmul.f32 0.03125, %v1324_v28 }
 0xbd4   : > { %v1330_v14 = vsub.f32 %v2572_v21, %v1328_v30 }
 0xbd5   : > { %v1327_v31 = vpop.xlane.xlu0 %1326 }
 0xbd6   : > { %v1329_v32 = vmul.f32 0.03125, %v1327_v31  ;;  %v1332_v33 = vmul.f32 %v1330_v14, %v1330_v14 }
 0xbd8   : > { %v1331_v34 = vsub.f32 %v2577_v26, %v1329_v32  ;;  %v1334_v35 = vsel %vm885_vm6, %v1332_v33, 0.0 }
 0xbd9   : > { %1335 = vadd.xlane.f32.xlu1 %v1334_v35 }
 0xbda   : > { %v1333_v36 = vmul.f32 %v1331_v34, %v1331_v34 }
 0xbdc   : > { %v1337_v15 = vsel %vm885_vm6, %v1333_v36, 0.0 }
 0xbdd   : > { %1338 = vadd.xlane.f32.xlu1 %v1337_v15 }
 0xc62   : > { %v1336_v39 = vpop.xlane.xlu1 %1335 }
 0xc63   : > { %v1340_v40 = vmul.f32 0.03125, %v1336_v39 }
 0xc65   : > { %v1342_v41 = vadd.f32 1e-05, %v1340_v40 }
 0xc66   : > { %v1339_v42 = vpop.xlane.xlu1 %1338 }
 0xc67   : > { %2100 = vrsqrt.f32 %v1342_v41  ;;  %v1341_v43 = vmul.f32 0.03125, %v1339_v42 }
 0xc69   : > { %v1343_v44 = vadd.f32 1e-05, %v1341_v43 }
 0xc6b   : > { %2102 = vrsqrt.f32 %v1343_v44 }
 0xc74   : > { %v2101_v45 = vpop.eup %2100 }
 0xc75   : > { %v1346_v46 = vmul.f32 %v2101_v45, %v1330_v14 }
 0xc77   : > { %v1352_v50 = vmul.f32 %v1805_v47, %v1346_v46 }
 0xc78   : > { %v2103_v48 = vpop.eup %2102 }
 0xc79   : > { %v1347_v49 = vmul.f32 %v2103_v48, %v1331_v34  ;;  %v1358_v52 = vadd.f32 %v1806_v51, %v1352_v50 }
 0xc7b   : > { %v1353_v53 = vmul.f32 %v1805_v47, %v1347_v49 }
 0xc7d   : > { %v1359_v54 = vadd.f32 %v1806_v51, %v1353_v53 }
 0xc7f   : > { %v1360_v55 = vpack.c.bf16 %v1359_v54, %v1358_v52 }
 0xc81   : > { %1938 = vmatmul.mubr.msk.bf16.vlgmr.msra.gmra.mxu0 %vm885_vm6, %v1360_v55 }
 0xd41   : > { %v1421_v61 = vpop.f32.mrf.mxu0 }
 0xd42   : > { %v1422_v63 = vadd.f32 %v1807_v60, %v1421_v61 }
 0xd43   : > { %v1939_v0 = vpop.f32.mrf.mxu0 }
 0xd44   : > { %v1428_v1 = vmul.f32 %v1422_v63, %v1422_v63 }
 0xd45   : > { %v1424_v2 = vpop.f32.mrf.mxu0 }
 0xd46   : > { %v1430_v3 = vmul.f32 %v1428_v1, %v1422_v63  ;;  %v1425_v4 = vadd.f32 %v1807_v60, %v1424_v2 }
 0xd47   : > { %v1940_v5 = vpop.f32.mrf.mxu0 }
 0xd48   : > { %v1432_v6 = vmul.f32 0.044715, %v1430_v3  ;;  %v1429_v7 = vmul.f32 %v1425_v4, %v1425_v4 }
 0xd4a   : > { %v1434_v8 = vadd.f32 %v1432_v6, %v1422_v63  ;;  %v1431_v9 = vmul.f32 %v1429_v7, %v1425_v4 }
 0xd4c   : > { %v1436_v29 = vmul.f32 0.7978846, %v1434_v8  ;;  %v1433_v10 = vmul.f32 0.044715, %v1431_v9 }
 0xd4e   : > { %2104 = vtanh.f32 %v1436_v29  ;;  %v1435_v11 = vadd.f32 %v1433_v10, %v1425_v4 }
 0xd50   : > { %v1437_v12 = vmul.f32 0.7978846, %v1435_v11 }
 0xd52   : > { %2106 = vtanh.f32 %v1437_v12 }
 0xd5b   : > { %v2105_v13 = vpop.eup %2104 }
 0xd5c   : > { %v1440_v16 = vadd.f32 1.0, %v2105_v13 }
 0xd5e   : > { %v1442_v18 = vmul.f32 0.5, %v1440_v16 }
 0xd5f   : > { %v2107_v17 = vpop.eup %2106 }
 0xd60   : > { %v1441_v19 = vadd.f32 1.0, %v2107_v17  ;;  %v1444_v22 = vmul.f32 %v1442_v18, %v1422_v63 }
 0xd62   : > { %v1443_v20 = vmul.f32 0.5, %v1441_v19 }
 0xd64   : > { %v1445_v23 = vmul.f32 %v1443_v20, %v1425_v4 }
 0xd66   : > { %v1446_v24 = vpack.c.bf16 %v1445_v23, %v1444_v22 }
 0xd68   : > { %1950 = vmatmul.mubr.msk.bf16.vlgmr.msra.gmra.mxu1 %vm1483_vm10, %v1446_v24 }
 0xe28   : > { %v1521_v27 = vpop.f32.mrf.mxu1 }
 0xe29   : > { %v1522_v28 = vadd.f32 %v1811_v25, %v1521_v27 }
 0xe2a   : > { %v1951_v30 = vpop.f32.mrf.mxu1 }
 0xe2b   : > { %v1528_v14 = vadd.f32 %v1522_v28, %v2572_v21 }
 0xe2c   : > { %v1524_v31 = vpop.f32.mrf.mxu1 }
 0xe2d   : > { %1530 = vst.msk [vmem:[#allocation2] sm:$0xff] %vm885_vm6, %v1528_v14  ;;  %v1525_v32 = vadd.f32 %v1811_v25, %v1524_v31  ;;  %1535 = sbr.rel (%p1817_p1) target bundleno = 3964 (0xf7c), region = 76 }
 0xe2e   : > { %v1952_v33 = vpop.f32.mrf.mxu1 }
 0xe2f   : > { %v1529_v34 = vadd.f32 %v1525_v32, %v2577_v26 }
 0xe31   : > { %1531 = vst.msk [vmem:[#allocation2 + $0x8] sm:$0xff] %vm885_vm6, %v1529_v34 }
 0xe32   : > { %v1541_v35 = vsel %vm885_vm6, %v1529_v34, 0.0  ;;  %v1538_v36 = vsel %vm885_vm6, %v1528_v14, 0.0  ;;  %v1577_v50 = vshrl.u32 %v873_v62, 7  ;;  %v1818_v52 = vld [vmem:[%s2674_s4 + $0x4] ss:$0 sm:$0xff]  ;;  %v2216_v58 = vmov 0.0  }
 0xe33   : > { %1542 = vadd.xlane.f32.xlu0 %v1541_v35  ;;  %v1819_v55 = vld [vmem:[%s2674_s4 + $0x5] ss:$0 sm:$0xff]  ;;  %vm1597_vm12 = vcmask 253952  }
 0xe34   : > { %v1578_v51 = vadd.s32 8, %v1577_v50 }
 0xe36   : > { %vm1580_vm11 = vcmp.lt.s32.totalorder %v1578_v51, 9 }
 0xe37   : > { %1539 = vadd.xlane.f32.xlu0 %v1538_v36  ;;  %v1820_v59 = vsel %vm1580_vm11, 1.0, %v2216_v58 }
 0xebc   : > { %v1543_v15 = vpop.xlane.xlu0 %1542 }
 0xebd   : > { %v1545_v21 = vmul.f32 0.03125, %v1543_v15 }
 0xebf   : > { %v1547_v37 = vsub.f32 %v1529_v34, %v1545_v21 }
 0xec0   : > { %v1540_v38 = vpop.xlane.xlu0 %1539 }
 0xec1   : > { %v1544_v39 = vmul.f32 0.03125, %v1540_v38  ;;  %v1549_v40 = vmul.f32 %v1547_v37, %v1547_v37 }
 0xec3   : > { %v1546_v41 = vsub.f32 %v1528_v14, %v1544_v39  ;;  %v1553_v26 = vsel %vm885_vm6, %v1549_v40, 0.0 }
 0xec4   : > { %1554 = vadd.xlane.f32.xlu1 %v1553_v26 }
 0xec5   : > { %v1548_v42 = vmul.f32 %v1546_v41, %v1546_v41 }
 0xec7   : > { %v1550_v43 = vsel %vm885_vm6, %v1548_v42, 0.0 }
 0xec8   : > { %1551 = vadd.xlane.f32.xlu1 %v1550_v43 }
 0xf4d   : > { %v1555_v44 = vpop.xlane.xlu1 %1554 }
 0xf4e   : > { %v1557_v45 = vmul.f32 0.03125, %v1555_v44 }
 0xf50   : > { %v1559_v46 = vadd.f32 1e-05, %v1557_v45 }
 0xf51   : > { %v1552_v47 = vpop.xlane.xlu1 %1551 }
 0xf52   : > { %2108 = vrsqrt.f32 %v1559_v46  ;;  %v1556_v48 = vmul.f32 0.03125, %v1552_v47 }
 0xf54   : > { %v1558_v49 = vadd.f32 1e-05, %v1556_v48 }
 0xf56   : > { %2110 = vrsqrt.f32 %v1558_v49 }
 0xf5f   : > { %v2109_v53 = vpop.eup %2108 }
 0xf60   : > { %v1563_v54 = vmul.f32 %v2109_v53, %v1547_v37 }
 0xf62   : > { %v1569_v56 = vmul.f32 %v1818_v52, %v1563_v54 }
 0xf63   : > { %v2111_v57 = vpop.eup %2110 }
 0xf64   : > { %v1575_v60 = vadd.f32 %v1819_v55, %v1569_v56  ;;  %v1562_v61 = vmul.f32 %v2111_v57, %v1546_v41 }
 0xf66   : > { %v1586_v62 = vmul.f32 %v1820_v59, %v1575_v60  ;;  %v1568_v63 = vmul.f32 %v1818_v52, %v1562_v61 }
 0xf68   : > { %v1574_v0 = vadd.f32 %v1819_v55, %v1568_v63  ;;  %v1588_v2 = vsel %vm885_vm6, %v1586_v62, 0.0 }
 0xf6a   : > { %v1587_v1 = vsel %vm885_vm6, %v1574_v0, 0.0 }
 0xf6b   : > { %v1589_v3 = vadd.f32 %v1588_v2, %v1587_v1 }
 0xf6d   : > { %v1590_v4 = vrot.slane %v1589_v3, 4 }
 0xf6f   : > { %v1591_v5 = vadd.f32 %v1590_v4, %v1589_v3 }
 0xf71   : > { %v1592_v6 = vrot.slane %v1591_v5, 2 }
 0xf73   : > { %v1593_v7 = vadd.f32 %v1592_v6, %v1591_v5 }
 0xf75   : > { %v1594_v8 = vrot.slane %v1593_v7, 1 }
 0xf77   : > { %v1595_v9 = vadd.f32 %v1594_v8, %v1593_v7 }
 0xf79   : > { %v1596_v29 = vmul.f32 0.11111111, %v1595_v9 }
 0xf7b   : > { %1598 = vst.msk [vmem:[%s2398_s12] sm:$0x1] %vm1597_vm12, %v1596_v29 }
 0xf7c PF: > { %s2716_s18 = sld [smem:[#allocation8_spill]]  ;;  %s1612_s16 = sshll.u32 %s2398_s12, 4  ;;  %s1613_s16 = int_to_ptr.vmem [resolvable:$true] %s1612_s16 }
 0xf7d   : > { %s2718_s25 = sld [smem:[#allocation20_spill]]  ;;  %s2720_s27 = sand.u32 1, %s2180_s22  }
 0xf7e   : > { %s1600_s20 = scalar_lea.sflag [#allocation4], %s2720_s27  ;;  %s2112_s13 = scalar_lea.vmem %s1613_s16, 16 }
 0xf7f   : > { %p2113_p2 = scmp.ne.s32.totalorder %s1613_s16, %s2112_s13  ;;  %s2217_s28 = smov [#allocation3]  }
 0xf80   : > { %s2116_s15 = sshll.u32 %s2217_s28, 4  ;;  %s2117_s15 = int_to_ptr.vmem [resolvable:$false] %s2116_s15 }
 0xf81   : > { %p2114_p4 = pnand %p2113_p2, %p2332_p3  ;;  %s2118_s21 = scalar_lea.vmem %s2117_s15, 32 }
 0xf82   : > { %s1821_s0 = sshll.u32 %s2716_s18, 4  ;;  %p2119_p6 = scmp.lt.s32.totalorder %s1613_s16, %s2117_s15 }
 0xf83   : > { %s2719_s19 = smov %s2718_s25  ;;  %s1610_s23 = scalar_lea.hbm %s2718_s25, %s1821_s0 }
 0xf84   : > { %p2115_p5 = pneg %p2114_p4  ;;  %p2120_p7 = scmp.lt.s32.totalorder %s2118_s21, %s2112_s13 }
 0xf86   : > { %p2121_p8 = por %p2120_p7, %p2119_p6 }
 0xf88   : > { %p2122_p10 = pnand %p2121_p8, %p2115_p5 }
 0xf8a   : > { %2125 = shalt.err (!%p2122_p10)
}
 0xf8b   : > { %s2126_s29 = scalar_lea.hbm %s1610_s23, 16  ;;  %s2130_s7 = scalar_lea.hbm %s2719_s19, 32 }
 0xf8c   : > { %p2127_p11 = scmp.ne.s32.totalorder %s1610_s23, %s2126_s29  ;;  %p2131_p0 = scmp.lt.s32.totalorder %s1610_s23, %s2719_s19 }
 0xf8d   : > { %p2132_p1 = scmp.lt.s32.totalorder %s2130_s7, %s2126_s29 }
 0xf8e   : > { %p2128_p12 = pnand %p2127_p11, %p2332_p3 }
 0xf8f   : > { %p2133_p2 = por %p2132_p1, %p2131_p0 }
 0xf90   : > { %p2129_p13 = pneg %p2128_p12 }
 0xf92   : > { %p2134_p4 = pnand %p2133_p2, %p2129_p13 }
 0xf94   : > { %2137 = shalt.err (!%p2134_p4)
}
 0xf95   : > { %1953 = dma.vmem_to_hbm [thread:$0]  (%p2332_p3), %s1613_s16, 16, %s1610_s23, %s1600_s20  }
 0xf96 PF: > { %s2721_s18 = sld [smem:[#allocation11_spill]] }
 0xf97   : > { %s2722_s0 = sld [smem:[#allocation6_spill]] }
 0xf9c   : > { %p1959_p5 = scmp.ge.s32.totalorder %s2721_s18, 2 }
 0xf9d   : > { %s1624_s26 = sand.u32 1, %s2722_s0  }
 0xf9e   : > { %p1956_p6 = pnand %p1959_p5, %p2342_p9  ;;  %s1625_s25 = scalar_lea.sflag [#allocation4], %s1624_s26 }
 0xfa0   : > { %p1957_p7 = pneg %p1956_p6 }
 0xfa2   : > { %2171 = dma.done.wait (%p1957_p7), %s1625_s25, 16  }
 0xfa3   : > { %2173 = vsyncadd (%p1957_p7), %s1625_s25, 4294967280  ;;  %s25_s28 = sadd.s32 1, %s2721_s18   ;;  %s2724_s27 = sld [smem:[#allocation7_spill]] }
 0xfa4   : > { %p22_p8 = scmp.ge.s32.totalorder %s25_s28, 6   ;;  %s2725_s23 = sld [smem:[#allocation16_spill]] }
 0xfa5   : > { %s2726_s24 = sld [smem:[#allocation9_spill]]  ;;  %s2730_s21 = smov %s2180_s22 }
 0xfa6   : > { %s2727_s25 = sld [smem:[#allocation10_spill]] }
 0xfa7   : > { %s2728_s26 = sld [smem:[#allocation12_spill]] }
 0xfa8   : > { %s2729_s14 = sld [smem:[#allocation14_spill]] }
 0xfa9   : > { %s2731_s22 = smov %s2724_s27 }
 0xfaa   :  { %24 = sbr.rel (!%p22_p8) target bundleno = 10 (0xa), region = 129 }
 0xfae   : > { %s2732_s27 = smov %s2729_s14 }
 0xfaf   :  { %1629 = vsyncpa [#allocation4], 1 }
 0xfb0   :  { %1631 = vsyncpa [#allocation4 + $0x1], 1 }

</bundles_post_ra>
